<compile_context>
chip_gen: v6e
topology: v6e:2x2x1
jax: 0.10.0
libtpu: 0.0.40
codegen_flags: <defaults>
</compile_context>

<pallas_src>
import functools

import jax
import jax.numpy as jnp
from jax import lax
from jax.experimental import pallas as pl
from jax.experimental.pallas import tpu as pltpu


def _ceil_to(x, m):
    return (x + m - 1) // m * m


def _pick_dq(D, H, SH, cap_rows):
    """Largest divisor dq of D with dq*SH <= cap_rows and sublane-aligned
    output tile (dq*H % 8 == 0); falls back to dq=D (full-dim block exempt)."""
    fits = [dq for dq in range(1, D + 1)
            if D % dq == 0 and dq * SH <= cap_rows and (dq * H) % 8 == 0]
    return max(fits) if fits else D


def _kw_toeplitz_weights(weight, W):
    """(3,3,3,Ci,Co) DHWIO weights -> (9, (W+2)*Ci, W*Co) banded block-Toeplitz.

    M[kd*3+kh][pw*Ci+ci, w*Co+co] = weight[kd,kh,pw-w,ci,co] if 0<=pw-w<=2 else 0,
    i.e. one matmul per (kd,kh) applies all 3 kw taps and the Ci contraction and
    emits the output packed densely along lanes as (w, co).
    """
    kD, kH, kW, Ci, Co = weight.shape
    Wp = W + 2
    pw_idx = jnp.arange(Wp)[None, :, None]
    w_idx = jnp.arange(W)[None, None, :]
    kw_idx = jnp.arange(kW)[:, None, None]
    ind = (pw_idx == w_idx + kw_idx).astype(jnp.float32)          # (3, Wp, W)
    w9 = weight.astype(jnp.float32).reshape(kD * kH, kW, Ci, Co)  # (9, 3, Ci, Co)
    t = jnp.einsum('kpw,tkio->tpiwo', ind, w9)                    # (9, Wp, Ci, W, Co)
    return t.reshape(kD * kH, Wp * Ci, W * Co)


def _conv3d_relu_kernel(x_ref, w_ref, b_ref, o_ref, *, shifts, SH, H, dq, qsteps):
    """One tile of 3x3x3 conv (padding=1) + bias + ReLU.

    x_ref: (RP, (W+2)*Ci)      padded, lane-packed slab of one batch element
                               (VMEM-resident across the qi grid axis).
    w_ref: (9, (W+2)*Ci, W*Co) banded block-Toeplitz weights (kw + Ci folded).
    b_ref: (1, W*Co)           f32 bias tiled along w.
    o_ref: (dq*H, W*Co)        valid output rows of dq D-planes.
    """
    QB = dq * SH

    if qsteps == 1:
        def window(s):                          # fully static slices
            return x_ref[s:s + QB, :]
    else:
        q0 = pl.program_id(1) * QB
        if QB % 8 == 0:
            q0 = pl.multiple_of(q0, 8)

        def window(s):
            return x_ref[pl.ds(q0 + s, QB), :]

    # 9 (kd, kh) taps; kw and Ci are folded into the weights' K axis.
    # Windows stay bf16 straight into the MXU; accumulate in f32.
    acc = jnp.dot(window(shifts[0]), w_ref[0], preferred_element_type=jnp.float32)
    for k in range(1, len(shifts)):
        acc = acc + jnp.dot(window(shifts[k]), w_ref[k],
                            preferred_element_type=jnp.float32)

    y = jnp.maximum(acc + b_ref[...], 0.0).astype(o_ref.dtype)

    # Drop junk rows (h >= H) at store time instead of a post-hoc HBM slice.
    for p in range(dq):
        o_ref[p * H:(p + 1) * H, :] = y[p * SH:p * SH + H, :]


def conv3d_relu_pallas(x_ndhwc, weight, bias, *, compute_dtype=jnp.bfloat16,
                       max_rows_per_step=1024):
    """One ConvBlock stage: Conv3d(k=3, stride=1, padding=1) + bias + ReLU.

    x_ndhwc: (N, D, H, W, Ci);  weight: (3, 3, 3, Ci, Co);  bias: (Co,)
    returns  (N, D, H, W, Co) in `compute_dtype`.
    """
    N, D, H, W, Ci = x_ndhwc.shape
    assert weight.shape[:3] == (3, 3, 3)
    Co = weight.shape[-1]
    SH = H + 2                    # padded-row stride per D plane
    LI = (W + 2) * Ci             # input lanes  (padded W x Ci)
    LO = W * Co                   # output lanes (valid  W x Co) — no junk columns
    RP = (D + 3) * SH             # padded rows (+1 trailing plane keeps junk reads in-bounds)

    # Halo pad once per stage; pack (pw, ci) into lanes, (pd, ph) into rows.
    xpad = jnp.pad(x_ndhwc.astype(compute_dtype),
                   ((0, 0), (1, 2), (1, 1), (1, 1), (0, 0)))
    xflat = xpad.reshape(N, RP, LI)

    wm = _kw_toeplitz_weights(weight, W).astype(compute_dtype)    # (9, LI, LO)
    b_tiled = jnp.tile(bias.astype(jnp.float32), W).reshape(1, LO)

    dq = _pick_dq(D, H, SH, max_rows_per_step)
    qsteps = D // dq
    shifts = tuple(kd * SH + kh for kd in range(3) for kh in range(3))

    kernel = functools.partial(_conv3d_relu_kernel, shifts=shifts, SH=SH, H=H,
                               dq=dq, qsteps=qsteps)

    # Explicit scoped-VMEM budget (v5e defaults to only 16 MiB): resident slab
    # + weights + output tiles (double-buffered) + headroom for window copies.
    slab = _ceil_to(RP, 16) * _ceil_to(LI, 128) * 2
    wbytes = 9 * _ceil_to(LI, 16) * _ceil_to(LO, 128) * 2
    obytes = _ceil_to(dq * H, 16) * _ceil_to(LO, 128) * 2
    vmem_limit = int(min(max(2 * (slab + wbytes + obytes) + (4 << 20), 16 << 20),
                         40 << 20))

    out = pl.pallas_call(
        kernel,
        out_shape=jax.ShapeDtypeStruct((N, D * H, LO), compute_dtype),
        grid_spec=pltpu.PrefetchScalarGridSpec(
            num_scalar_prefetch=0,
            grid=(N, qsteps),
            in_specs=[
                # Whole padded slab of batch element n; resident across qi.
                pl.BlockSpec((None, RP, LI), lambda n, qi: (n, 0, 0)),
                pl.BlockSpec((9, LI, LO), lambda n, qi: (0, 0, 0)),
                pl.BlockSpec((1, LO), lambda n, qi: (0, 0)),
            ],
            out_specs=pl.BlockSpec((None, dq * H, LO), lambda n, qi: (n, qi, 0)),
        ),
        compiler_params=pltpu.CompilerParams(
            # Megacore split lands on the batch axis only, so each TensorCore
            # fetches and holds only its own slab.
            dimension_semantics=("parallel", "arbitrary"),
            vmem_limit_bytes=vmem_limit),
    )(xflat, wm, b_tiled)

    # (N, D*H, W*Co) -> (N, D, H, W, Co): metadata-only, no extra HBM pass.
    return out.reshape(N, D, H, W, Co)


def conv_block_forward(x_ndhwc, params, *, compute_dtype=jnp.bfloat16):
    """ConvBlock.forward with normalization='none': repeated conv3d + ReLU."""
    y = x_ndhwc
    for w, b in params:
        y = conv3d_relu_pallas(y, w, b, compute_dtype=compute_dtype)
    return y


def conv_block_reference(x_ndhwc, params, *, compute_dtype=jnp.bfloat16):
    """Pure-JAX reference with identical dtype handling (bf16 ops, f32 acc)."""
    y = x_ndhwc
    for w, b in params:
        z = lax.conv_general_dilated(
            y.astype(compute_dtype), w.astype(compute_dtype),
            window_strides=(1, 1, 1), padding="SAME",
            dimension_numbers=("NDHWC", "DHWIO", "NDHWC"),
            preferred_element_type=jnp.float32)
        y = jnp.maximum(z + b.astype(jnp.float32), 0.0).astype(compute_dtype)
    return y


def init_conv_block_params(key, n_stages, n_filters_in, n_filters_out):
    """Deterministic synthetic init (matches PyTorch Conv3d default ranges)."""
    params = []
    cin = n_filters_in
    keys = jax.random.split(key, 2 * n_stages)
    for i in range(n_stages):
        fan_in = cin * 3 * 3 * 3
        bound = 1.0 / (fan_in ** 0.5)
        w = jax.random.uniform(keys[2 * i], (3, 3, 3, cin, n_filters_out),
                               jnp.float32, -bound, bound)
        b = jax.random.uniform(keys[2 * i + 1], (n_filters_out,),
                               jnp.float32, -bound, bound)
        params.append((w, b))
        cin = n_filters_out
    return params


if __name__ == "__main__":
    key = jax.random.PRNGKey(0)
    kx, kp = jax.random.split(key)

    # ConvBlock(n_stages=2, n_filters_in=4, n_filters_out=8), NCDHW input.
    N, Cin, Cout, D, H, W = 2, 4, 8, 8, 8, 8
    n_stages = 2

    x_ncdhw = jax.random.normal(kx, (N, Cin, D, H, W), jnp.float32)
    x = jnp.transpose(x_ncdhw, (0, 2, 3, 4, 1))          # NCDHW -> NDHWC

    params = init_conv_block_params(kp, n_stages, Cin, Cout)

    y = jax.jit(conv_block_forward)(x, params)
    y = jax.block_until_ready(y)

    ref = conv_block_reference(x, params)

    assert y.shape == (N, D, H, W, Cout), y.shape
    yf = y.astype(jnp.float32)
    rf = ref.astype(jnp.float32)
    max_err = float(jnp.max(jnp.abs(yf - rf)))
    assert jnp.allclose(yf, rf, atol=2e-2, rtol=2e-2), \
        f"mismatch vs reference, max|err|={max_err}"

    print("KERNEL_OK")
</pallas_src>

<mosaic_0001>
module attributes {stable_mosaic.version = 11 : i64} {
  func.func @_conv3d_relu_kernel(%arg0: i32, %arg1: i32, %arg2: memref<1x110x40xbf16, #tpu.memory_space<vmem>>, %arg3: memref<9x40x64xbf16, #tpu.memory_space<vmem>>, %arg4: memref<1x64xf32, #tpu.memory_space<vmem>>, %arg5: memref<1x64x64xbf16, #tpu.memory_space<vmem>>) attributes {dimension_semantics = [#tpu.dimension_semantics<parallel>, #tpu.dimension_semantics<arbitrary>], iteration_bounds = array<i64: 2, 1>, scalar_prefetch = 0 : i64, scratch_operands = 0 : i64, tpu.core_type = #tpu.core_type<tc>, window_params = [{transform_indices = @transform_0, window_bounds = array<i64: 1, 110, 40>}, {pipeline_mode = #tpu.pipeline_mode<synchronous>, transform_indices = @transform_1, window_bounds = array<i64: 9, 40, 64>}, {pipeline_mode = #tpu.pipeline_mode<synchronous>, transform_indices = @transform_2, window_bounds = array<i64: 1, 64>}, {transform_indices = @transform_3, window_bounds = array<i64: 1, 64, 64>}]} {
    %c0 = arith.constant 0 : index
    %c0_0 = arith.constant 0 : index
    %c0_1 = arith.constant 0 : index
    %0 = vector.load %arg2[%c0, %c0_0, %c0_1] : memref<1x110x40xbf16, #tpu.memory_space<vmem>>, vector<1x80x40xbf16>
    %1 = vector.shape_cast %0 : vector<1x80x40xbf16> to vector<80x40xbf16>
    %c0_2 = arith.constant 0 : index
    %c0_3 = arith.constant 0 : index
    %c0_4 = arith.constant 0 : index
    %2 = vector.load %arg3[%c0_2, %c0_3, %c0_4] : memref<9x40x64xbf16, #tpu.memory_space<vmem>>, vector<1x40x64xbf16>
    %3 = vector.shape_cast %2 : vector<1x40x64xbf16> to vector<40x64xbf16>
    %cst = arith.constant dense<0.000000e+00> : vector<80x64xf32>
    %4 = tpu.matmul %1, %3, %cst {dimension_numbers = #tpu.dot_dimension_numbers<[1], [0], [0], [1], [0, 0, 1, 1], [], []>} : vector<80x40xbf16>, vector<40x64xbf16>, vector<80x64xf32> -> vector<80x64xf32>
    %c0_5 = arith.constant 0 : index
    %c1 = arith.constant 1 : index
    %c0_6 = arith.constant 0 : index
    %5 = vector.load %arg2[%c0_5, %c1, %c0_6] : memref<1x110x40xbf16, #tpu.memory_space<vmem>>, vector<1x80x40xbf16>
    %6 = vector.shape_cast %5 : vector<1x80x40xbf16> to vector<80x40xbf16>
    %c1_7 = arith.constant 1 : index
    %c0_8 = arith.constant 0 : index
    %c0_9 = arith.constant 0 : index
    %7 = vector.load %arg3[%c1_7, %c0_8, %c0_9] : memref<9x40x64xbf16, #tpu.memory_space<vmem>>, vector<1x40x64xbf16>
    %8 = vector.shape_cast %7 : vector<1x40x64xbf16> to vector<40x64xbf16>
    %cst_10 = arith.constant dense<0.000000e+00> : vector<80x64xf32>
    %9 = tpu.matmul %6, %8, %cst_10 {dimension_numbers = #tpu.dot_dimension_numbers<[1], [0], [0], [1], [0, 0, 1, 1], [], []>} : vector<80x40xbf16>, vector<40x64xbf16>, vector<80x64xf32> -> vector<80x64xf32>
    %10 = arith.addf %4, %9 : vector<80x64xf32>
    %c0_11 = arith.constant 0 : index
    %c2 = arith.constant 2 : index
    %c0_12 = arith.constant 0 : index
    %11 = vector.load %arg2[%c0_11, %c2, %c0_12] : memref<1x110x40xbf16, #tpu.memory_space<vmem>>, vector<1x80x40xbf16>
    %12 = vector.shape_cast %11 : vector<1x80x40xbf16> to vector<80x40xbf16>
    %c2_13 = arith.constant 2 : index
    %c0_14 = arith.constant 0 : index
    %c0_15 = arith.constant 0 : index
    %13 = vector.load %arg3[%c2_13, %c0_14, %c0_15] : memref<9x40x64xbf16, #tpu.memory_space<vmem>>, vector<1x40x64xbf16>
    %14 = vector.shape_cast %13 : vector<1x40x64xbf16> to vector<40x64xbf16>
    %cst_16 = arith.constant dense<0.000000e+00> : vector<80x64xf32>
    %15 = tpu.matmul %12, %14, %cst_16 {dimension_numbers = #tpu.dot_dimension_numbers<[1], [0], [0], [1], [0, 0, 1, 1], [], []>} : vector<80x40xbf16>, vector<40x64xbf16>, vector<80x64xf32> -> vector<80x64xf32>
    %16 = arith.addf %10, %15 : vector<80x64xf32>
    %c0_17 = arith.constant 0 : index
    %c10 = arith.constant 10 : index
    %c0_18 = arith.constant 0 : index
    %17 = vector.load %arg2[%c0_17, %c10, %c0_18] : memref<1x110x40xbf16, #tpu.memory_space<vmem>>, vector<1x80x40xbf16>
    %18 = vector.shape_cast %17 : vector<1x80x40xbf16> to vector<80x40xbf16>
    %c3 = arith.constant 3 : index
    %c0_19 = arith.constant 0 : index
    %c0_20 = arith.constant 0 : index
    %19 = vector.load %arg3[%c3, %c0_19, %c0_20] : memref<9x40x64xbf16, #tpu.memory_space<vmem>>, vector<1x40x64xbf16>
    %20 = vector.shape_cast %19 : vector<1x40x64xbf16> to vector<40x64xbf16>
    %cst_21 = arith.constant dense<0.000000e+00> : vector<80x64xf32>
    %21 = tpu.matmul %18, %20, %cst_21 {dimension_numbers = #tpu.dot_dimension_numbers<[1], [0], [0], [1], [0, 0, 1, 1], [], []>} : vector<80x40xbf16>, vector<40x64xbf16>, vector<80x64xf32> -> vector<80x64xf32>
    %22 = arith.addf %16, %21 : vector<80x64xf32>
    %c0_22 = arith.constant 0 : index
    %c11 = arith.constant 11 : index
    %c0_23 = arith.constant 0 : index
    %23 = vector.load %arg2[%c0_22, %c11, %c0_23] : memref<1x110x40xbf16, #tpu.memory_space<vmem>>, vector<1x80x40xbf16>
    %24 = vector.shape_cast %23 : vector<1x80x40xbf16> to vector<80x40xbf16>
    %c4 = arith.constant 4 : index
    %c0_24 = arith.constant 0 : index
    %c0_25 = arith.constant 0 : index
    %25 = vector.load %arg3[%c4, %c0_24, %c0_25] : memref<9x40x64xbf16, #tpu.memory_space<vmem>>, vector<1x40x64xbf16>
    %26 = vector.shape_cast %25 : vector<1x40x64xbf16> to vector<40x64xbf16>
    %cst_26 = arith.constant dense<0.000000e+00> : vector<80x64xf32>
    %27 = tpu.matmul %24, %26, %cst_26 {dimension_numbers = #tpu.dot_dimension_numbers<[1], [0], [0], [1], [0, 0, 1, 1], [], []>} : vector<80x40xbf16>, vector<40x64xbf16>, vector<80x64xf32> -> vector<80x64xf32>
    %28 = arith.addf %22, %27 : vector<80x64xf32>
    %c0_27 = arith.constant 0 : index
    %c12 = arith.constant 12 : index
    %c0_28 = arith.constant 0 : index
    %29 = vector.load %arg2[%c0_27, %c12, %c0_28] : memref<1x110x40xbf16, #tpu.memory_space<vmem>>, vector<1x80x40xbf16>
    %30 = vector.shape_cast %29 : vector<1x80x40xbf16> to vector<80x40xbf16>
    %c5 = arith.constant 5 : index
    %c0_29 = arith.constant 0 : index
    %c0_30 = arith.constant 0 : index
    %31 = vector.load %arg3[%c5, %c0_29, %c0_30] : memref<9x40x64xbf16, #tpu.memory_space<vmem>>, vector<1x40x64xbf16>
    %32 = vector.shape_cast %31 : vector<1x40x64xbf16> to vector<40x64xbf16>
    %cst_31 = arith.constant dense<0.000000e+00> : vector<80x64xf32>
    %33 = tpu.matmul %30, %32, %cst_31 {dimension_numbers = #tpu.dot_dimension_numbers<[1], [0], [0], [1], [0, 0, 1, 1], [], []>} : vector<80x40xbf16>, vector<40x64xbf16>, vector<80x64xf32> -> vector<80x64xf32>
    %34 = arith.addf %28, %33 : vector<80x64xf32>
    %c0_32 = arith.constant 0 : index
    %c20 = arith.constant 20 : index
    %c0_33 = arith.constant 0 : index
    %35 = vector.load %arg2[%c0_32, %c20, %c0_33] : memref<1x110x40xbf16, #tpu.memory_space<vmem>>, vector<1x80x40xbf16>
    %36 = vector.shape_cast %35 : vector<1x80x40xbf16> to vector<80x40xbf16>
    %c6 = arith.constant 6 : index
    %c0_34 = arith.constant 0 : index
    %c0_35 = arith.constant 0 : index
    %37 = vector.load %arg3[%c6, %c0_34, %c0_35] : memref<9x40x64xbf16, #tpu.memory_space<vmem>>, vector<1x40x64xbf16>
    %38 = vector.shape_cast %37 : vector<1x40x64xbf16> to vector<40x64xbf16>
    %cst_36 = arith.constant dense<0.000000e+00> : vector<80x64xf32>
    %39 = tpu.matmul %36, %38, %cst_36 {dimension_numbers = #tpu.dot_dimension_numbers<[1], [0], [0], [1], [0, 0, 1, 1], [], []>} : vector<80x40xbf16>, vector<40x64xbf16>, vector<80x64xf32> -> vector<80x64xf32>
    %40 = arith.addf %34, %39 : vector<80x64xf32>
    %c0_37 = arith.constant 0 : index
    %c21 = arith.constant 21 : index
    %c0_38 = arith.constant 0 : index
    %41 = vector.load %arg2[%c0_37, %c21, %c0_38] : memref<1x110x40xbf16, #tpu.memory_space<vmem>>, vector<1x80x40xbf16>
    %42 = vector.shape_cast %41 : vector<1x80x40xbf16> to vector<80x40xbf16>
    %c7 = arith.constant 7 : index
    %c0_39 = arith.constant 0 : index
    %c0_40 = arith.constant 0 : index
    %43 = vector.load %arg3[%c7, %c0_39, %c0_40] : memref<9x40x64xbf16, #tpu.memory_space<vmem>>, vector<1x40x64xbf16>
    %44 = vector.shape_cast %43 : vector<1x40x64xbf16> to vector<40x64xbf16>
    %cst_41 = arith.constant dense<0.000000e+00> : vector<80x64xf32>
    %45 = tpu.matmul %42, %44, %cst_41 {dimension_numbers = #tpu.dot_dimension_numbers<[1], [0], [0], [1], [0, 0, 1, 1], [], []>} : vector<80x40xbf16>, vector<40x64xbf16>, vector<80x64xf32> -> vector<80x64xf32>
    %46 = arith.addf %40, %45 : vector<80x64xf32>
    %c0_42 = arith.constant 0 : index
    %c22 = arith.constant 22 : index
    %c0_43 = arith.constant 0 : index
    %47 = vector.load %arg2[%c0_42, %c22, %c0_43] : memref<1x110x40xbf16, #tpu.memory_space<vmem>>, vector<1x80x40xbf16>
    %48 = vector.shape_cast %47 : vector<1x80x40xbf16> to vector<80x40xbf16>
    %c8 = arith.constant 8 : index
    %c0_44 = arith.constant 0 : index
    %c0_45 = arith.constant 0 : index
    %49 = vector.load %arg3[%c8, %c0_44, %c0_45] : memref<9x40x64xbf16, #tpu.memory_space<vmem>>, vector<1x40x64xbf16>
    %50 = vector.shape_cast %49 : vector<1x40x64xbf16> to vector<40x64xbf16>
    %cst_46 = arith.constant dense<0.000000e+00> : vector<80x64xf32>
    %51 = tpu.matmul %48, %50, %cst_46 {dimension_numbers = #tpu.dot_dimension_numbers<[1], [0], [0], [1], [0, 0, 1, 1], [], []>} : vector<80x40xbf16>, vector<40x64xbf16>, vector<80x64xf32> -> vector<80x64xf32>
    %52 = arith.addf %46, %51 : vector<80x64xf32>
    %c0_47 = arith.constant 0 : index
    %c0_48 = arith.constant 0 : index
    %53 = vector.load %arg4[%c0_47, %c0_48] : memref<1x64xf32, #tpu.memory_space<vmem>>, vector<1x64xf32>
    %54 = vector.broadcast %53 : vector<1x64xf32> to vector<80x64xf32>
    %55 = arith.addf %52, %54 : vector<80x64xf32>
    %cst_49 = arith.constant 0.000000e+00 : f32
    %56 = vector.broadcast %cst_49 : f32 to vector<80x64xf32>
    %57 = arith.maximumf %55, %56 : vector<80x64xf32>
    %58 = arith.truncf %57 : vector<80x64xf32> to vector<80x64xbf16>
    %59 = vector.extract_strided_slice %58 {offsets = [0, 0], sizes = [8, 64], strides = [1, 1]} : vector<80x64xbf16> to vector<8x64xbf16>
    %c0_50 = arith.constant 0 : index
    %c0_51 = arith.constant 0 : index
    %c0_52 = arith.constant 0 : index
    %60 = vector.load %arg5[%c0_50, %c0_51, %c0_52] : memref<1x64x64xbf16, #tpu.memory_space<vmem>>, vector<1x8x64xbf16>
    %61 = vector.shape_cast %60 : vector<1x8x64xbf16> to vector<8x64xbf16>
    %62 = vector.shape_cast %59 : vector<8x64xbf16> to vector<1x8x64xbf16>
    tpu.vector_store %arg5[%c0_50, %c0_51, %c0_52], %62 {strides = array<i32>} : memref<1x64x64xbf16, #tpu.memory_space<vmem>>, vector<1x8x64xbf16>,
    %63 = vector.extract_strided_slice %58 {offsets = [10, 0], sizes = [8, 64], strides = [1, 1]} : vector<80x64xbf16> to vector<8x64xbf16>
    %c0_53 = arith.constant 0 : index
    %c8_54 = arith.constant 8 : index
    %c0_55 = arith.constant 0 : index
    %64 = vector.load %arg5[%c0_53, %c8_54, %c0_55] : memref<1x64x64xbf16, #tpu.memory_space<vmem>>, vector<1x8x64xbf16>
    %65 = vector.shape_cast %64 : vector<1x8x64xbf16> to vector<8x64xbf16>
    %66 = vector.shape_cast %63 : vector<8x64xbf16> to vector<1x8x64xbf16>
    tpu.vector_store %arg5[%c0_53, %c8_54, %c0_55], %66 {strides = array<i32>} : memref<1x64x64xbf16, #tpu.memory_space<vmem>>, vector<1x8x64xbf16>,
    %67 = vector.extract_strided_slice %58 {offsets = [20, 0], sizes = [8, 64], strides = [1, 1]} : vector<80x64xbf16> to vector<8x64xbf16>
    %c0_56 = arith.constant 0 : index
    %c16 = arith.constant 16 : index
    %c0_57 = arith.constant 0 : index
    %68 = vector.load %arg5[%c0_56, %c16, %c0_57] : memref<1x64x64xbf16, #tpu.memory_space<vmem>>, vector<1x8x64xbf16>
    %69 = vector.shape_cast %68 : vector<1x8x64xbf16> to vector<8x64xbf16>
    %70 = vector.shape_cast %67 : vector<8x64xbf16> to vector<1x8x64xbf16>
    tpu.vector_store %arg5[%c0_56, %c16, %c0_57], %70 {strides = array<i32>} : memref<1x64x64xbf16, #tpu.memory_space<vmem>>, vector<1x8x64xbf16>,
    %71 = vector.extract_strided_slice %58 {offsets = [30, 0], sizes = [8, 64], strides = [1, 1]} : vector<80x64xbf16> to vector<8x64xbf16>
    %c0_58 = arith.constant 0 : index
    %c24 = arith.constant 24 : index
    %c0_59 = arith.constant 0 : index
    %72 = vector.load %arg5[%c0_58, %c24, %c0_59] : memref<1x64x64xbf16, #tpu.memory_space<vmem>>, vector<1x8x64xbf16>
    %73 = vector.shape_cast %72 : vector<1x8x64xbf16> to vector<8x64xbf16>
    %74 = vector.shape_cast %71 : vector<8x64xbf16> to vector<1x8x64xbf16>
    tpu.vector_store %arg5[%c0_58, %c24, %c0_59], %74 {strides = array<i32>} : memref<1x64x64xbf16, #tpu.memory_space<vmem>>, vector<1x8x64xbf16>,
    %75 = vector.extract_strided_slice %58 {offsets = [40, 0], sizes = [8, 64], strides = [1, 1]} : vector<80x64xbf16> to vector<8x64xbf16>
    %c0_60 = arith.constant 0 : index
    %c32 = arith.constant 32 : index
    %c0_61 = arith.constant 0 : index
    %76 = vector.load %arg5[%c0_60, %c32, %c0_61] : memref<1x64x64xbf16, #tpu.memory_space<vmem>>, vector<1x8x64xbf16>
    %77 = vector.shape_cast %76 : vector<1x8x64xbf16> to vector<8x64xbf16>
    %78 = vector.shape_cast %75 : vector<8x64xbf16> to vector<1x8x64xbf16>
    tpu.vector_store %arg5[%c0_60, %c32, %c0_61], %78 {strides = array<i32>} : memref<1x64x64xbf16, #tpu.memory_space<vmem>>, vector<1x8x64xbf16>,
    %79 = vector.extract_strided_slice %58 {offsets = [50, 0], sizes = [8, 64], strides = [1, 1]} : vector<80x64xbf16> to vector<8x64xbf16>
    %c0_62 = arith.constant 0 : index
    %c40 = arith.constant 40 : index
    %c0_63 = arith.constant 0 : index
    %80 = vector.load %arg5[%c0_62, %c40, %c0_63] : memref<1x64x64xbf16, #tpu.memory_space<vmem>>, vector<1x8x64xbf16>
    %81 = vector.shape_cast %80 : vector<1x8x64xbf16> to vector<8x64xbf16>
    %82 = vector.shape_cast %79 : vector<8x64xbf16> to vector<1x8x64xbf16>
    tpu.vector_store %arg5[%c0_62, %c40, %c0_63], %82 {strides = array<i32>} : memref<1x64x64xbf16, #tpu.memory_space<vmem>>, vector<1x8x64xbf16>,
    %83 = vector.extract_strided_slice %58 {offsets = [60, 0], sizes = [8, 64], strides = [1, 1]} : vector<80x64xbf16> to vector<8x64xbf16>
    %c0_64 = arith.constant 0 : index
    %c48 = arith.constant 48 : index
    %c0_65 = arith.constant 0 : index
    %84 = vector.load %arg5[%c0_64, %c48, %c0_65] : memref<1x64x64xbf16, #tpu.memory_space<vmem>>, vector<1x8x64xbf16>
    %85 = vector.shape_cast %84 : vector<1x8x64xbf16> to vector<8x64xbf16>
    %86 = vector.shape_cast %83 : vector<8x64xbf16> to vector<1x8x64xbf16>
    tpu.vector_store %arg5[%c0_64, %c48, %c0_65], %86 {strides = array<i32>} : memref<1x64x64xbf16, #tpu.memory_space<vmem>>, vector<1x8x64xbf16>,
    %87 = vector.extract_strided_slice %58 {offsets = [70, 0], sizes = [8, 64], strides = [1, 1]} : vector<80x64xbf16> to vector<8x64xbf16>
    %c0_66 = arith.constant 0 : index
    %c56 = arith.constant 56 : index
    %c0_67 = arith.constant 0 : index
    %88 = vector.load %arg5[%c0_66, %c56, %c0_67] : memref<1x64x64xbf16, #tpu.memory_space<vmem>>, vector<1x8x64xbf16>
    %89 = vector.shape_cast %88 : vector<1x8x64xbf16> to vector<8x64xbf16>
    %90 = vector.shape_cast %87 : vector<8x64xbf16> to vector<1x8x64xbf16>
    tpu.vector_store %arg5[%c0_66, %c56, %c0_67], %90 {strides = array<i32>} : memref<1x64x64xbf16, #tpu.memory_space<vmem>>, vector<1x8x64xbf16>,
    return
  }
  func.func @transform_0(%arg0: i32, %arg1: i32) -> (i32, i32, i32) {
    %c0_i32 = arith.constant 0 : i32
    %c0_i32_0 = arith.constant 0 : i32
    %c0_i32_1 = arith.constant 0 : i32
    return %arg0, %c0_i32, %c0_i32_0 : i32, i32, i32
  }
  func.func @transform_1(%arg0: i32, %arg1: i32) -> (i32, i32, i32) {
    %c0_i32 = arith.constant 0 : i32
    %c0_i32_0 = arith.constant 0 : i32
    %c0_i32_1 = arith.constant 0 : i32
    %c0_i32_2 = arith.constant 0 : i32
    return %c0_i32, %c0_i32_0, %c0_i32_1 : i32, i32, i32
  }
  func.func @transform_2(%arg0: i32, %arg1: i32) -> (i32, i32) {
    %c0_i32 = arith.constant 0 : i32
    %c0_i32_0 = arith.constant 0 : i32
    %c0_i32_1 = arith.constant 0 : i32
    return %c0_i32, %c0_i32_0 : i32, i32
  }
  func.func @transform_3(%arg0: i32, %arg1: i32) -> (i32, i32, i32) {
    %c0_i32 = arith.constant 0 : i32
    %c0_i32_0 = arith.constant 0 : i32
    return %arg0, %arg1, %c0_i32 : i32, i32, i32
  }
}

module attributes {stable_mosaic.version = 11 : i64} {
  func.func @_conv3d_relu_kernel(%arg0: i32, %arg1: i32, %arg2: memref<1x110x80xbf16, #tpu.memory_space<vmem>>, %arg3: memref<9x80x64xbf16, #tpu.memory_space<vmem>>, %arg4: memref<1x64xf32, #tpu.memory_space<vmem>>, %arg5: memref<1x64x64xbf16, #tpu.memory_space<vmem>>) attributes {dimension_semantics = [#tpu.dimension_semantics<parallel>, #tpu.dimension_semantics<arbitrary>], iteration_bounds = array<i64: 2, 1>, scalar_prefetch = 0 : i64, scratch_operands = 0 : i64, tpu.core_type = #tpu.core_type<tc>, window_params = [{transform_indices = @transform_0, window_bounds = array<i64: 1, 110, 80>}, {pipeline_mode = #tpu.pipeline_mode<synchronous>, transform_indices = @transform_1, window_bounds = array<i64: 9, 80, 64>}, {pipeline_mode = #tpu.pipeline_mode<synchronous>, transform_indices = @transform_2, window_bounds = array<i64: 1, 64>}, {transform_indices = @transform_3, window_bounds = array<i64: 1, 64, 64>}]} {
    %c0 = arith.constant 0 : index
    %c0_0 = arith.constant 0 : index
    %c0_1 = arith.constant 0 : index
    %0 = vector.load %arg2[%c0, %c0_0, %c0_1] : memref<1x110x80xbf16, #tpu.memory_space<vmem>>, vector<1x80x80xbf16>
    %1 = vector.shape_cast %0 : vector<1x80x80xbf16> to vector<80x80xbf16>
    %c0_2 = arith.constant 0 : index
    %c0_3 = arith.constant 0 : index
    %c0_4 = arith.constant 0 : index
    %2 = vector.load %arg3[%c0_2, %c0_3, %c0_4] : memref<9x80x64xbf16, #tpu.memory_space<vmem>>, vector<1x80x64xbf16>
    %3 = vector.shape_cast %2 : vector<1x80x64xbf16> to vector<80x64xbf16>
    %cst = arith.constant dense<0.000000e+00> : vector<80x64xf32>
    %4 = tpu.matmul %1, %3, %cst {dimension_numbers = #tpu.dot_dimension_numbers<[1], [0], [0], [1], [0, 0, 1, 1], [], []>} : vector<80x80xbf16>, vector<80x64xbf16>, vector<80x64xf32> -> vector<80x64xf32>
    %c0_5 = arith.constant 0 : index
    %c1 = arith.constant 1 : index
    %c0_6 = arith.constant 0 : index
    %5 = vector.load %arg2[%c0_5, %c1, %c0_6] : memref<1x110x80xbf16, #tpu.memory_space<vmem>>, vector<1x80x80xbf16>
    %6 = vector.shape_cast %5 : vector<1x80x80xbf16> to vector<80x80xbf16>
    %c1_7 = arith.constant 1 : index
    %c0_8 = arith.constant 0 : index
    %c0_9 = arith.constant 0 : index
    %7 = vector.load %arg3[%c1_7, %c0_8, %c0_9] : memref<9x80x64xbf16, #tpu.memory_space<vmem>>, vector<1x80x64xbf16>
    %8 = vector.shape_cast %7 : vector<1x80x64xbf16> to vector<80x64xbf16>
    %cst_10 = arith.constant dense<0.000000e+00> : vector<80x64xf32>
    %9 = tpu.matmul %6, %8, %cst_10 {dimension_numbers = #tpu.dot_dimension_numbers<[1], [0], [0], [1], [0, 0, 1, 1], [], []>} : vector<80x80xbf16>, vector<80x64xbf16>, vector<80x64xf32> -> vector<80x64xf32>
    %10 = arith.addf %4, %9 : vector<80x64xf32>
    %c0_11 = arith.constant 0 : index
    %c2 = arith.constant 2 : index
    %c0_12 = arith.constant 0 : index
    %11 = vector.load %arg2[%c0_11, %c2, %c0_12] : memref<1x110x80xbf16, #tpu.memory_space<vmem>>, vector<1x80x80xbf16>
    %12 = vector.shape_cast %11 : vector<1x80x80xbf16> to vector<80x80xbf16>
    %c2_13 = arith.constant 2 : index
    %c0_14 = arith.constant 0 : index
    %c0_15 = arith.constant 0 : index
    %13 = vector.load %arg3[%c2_13, %c0_14, %c0_15] : memref<9x80x64xbf16, #tpu.memory_space<vmem>>, vector<1x80x64xbf16>
    %14 = vector.shape_cast %13 : vector<1x80x64xbf16> to vector<80x64xbf16>
    %cst_16 = arith.constant dense<0.000000e+00> : vector<80x64xf32>
    %15 = tpu.matmul %12, %14, %cst_16 {dimension_numbers = #tpu.dot_dimension_numbers<[1], [0], [0], [1], [0, 0, 1, 1], [], []>} : vector<80x80xbf16>, vector<80x64xbf16>, vector<80x64xf32> -> vector<80x64xf32>
    %16 = arith.addf %10, %15 : vector<80x64xf32>
    %c0_17 = arith.constant 0 : index
    %c10 = arith.constant 10 : index
    %c0_18 = arith.constant 0 : index
    %17 = vector.load %arg2[%c0_17, %c10, %c0_18] : memref<1x110x80xbf16, #tpu.memory_space<vmem>>, vector<1x80x80xbf16>
    %18 = vector.shape_cast %17 : vector<1x80x80xbf16> to vector<80x80xbf16>
    %c3 = arith.constant 3 : index
    %c0_19 = arith.constant 0 : index
    %c0_20 = arith.constant 0 : index
    %19 = vector.load %arg3[%c3, %c0_19, %c0_20] : memref<9x80x64xbf16, #tpu.memory_space<vmem>>, vector<1x80x64xbf16>
    %20 = vector.shape_cast %19 : vector<1x80x64xbf16> to vector<80x64xbf16>
    %cst_21 = arith.constant dense<0.000000e+00> : vector<80x64xf32>
    %21 = tpu.matmul %18, %20, %cst_21 {dimension_numbers = #tpu.dot_dimension_numbers<[1], [0], [0], [1], [0, 0, 1, 1], [], []>} : vector<80x80xbf16>, vector<80x64xbf16>, vector<80x64xf32> -> vector<80x64xf32>
    %22 = arith.addf %16, %21 : vector<80x64xf32>
    %c0_22 = arith.constant 0 : index
    %c11 = arith.constant 11 : index
    %c0_23 = arith.constant 0 : index
    %23 = vector.load %arg2[%c0_22, %c11, %c0_23] : memref<1x110x80xbf16, #tpu.memory_space<vmem>>, vector<1x80x80xbf16>
    %24 = vector.shape_cast %23 : vector<1x80x80xbf16> to vector<80x80xbf16>
    %c4 = arith.constant 4 : index
    %c0_24 = arith.constant 0 : index
    %c0_25 = arith.constant 0 : index
    %25 = vector.load %arg3[%c4, %c0_24, %c0_25] : memref<9x80x64xbf16, #tpu.memory_space<vmem>>, vector<1x80x64xbf16>
    %26 = vector.shape_cast %25 : vector<1x80x64xbf16> to vector<80x64xbf16>
    %cst_26 = arith.constant dense<0.000000e+00> : vector<80x64xf32>
    %27 = tpu.matmul %24, %26, %cst_26 {dimension_numbers = #tpu.dot_dimension_numbers<[1], [0], [0], [1], [0, 0, 1, 1], [], []>} : vector<80x80xbf16>, vector<80x64xbf16>, vector<80x64xf32> -> vector<80x64xf32>
    %28 = arith.addf %22, %27 : vector<80x64xf32>
    %c0_27 = arith.constant 0 : index
    %c12 = arith.constant 12 : index
    %c0_28 = arith.constant 0 : index
    %29 = vector.load %arg2[%c0_27, %c12, %c0_28] : memref<1x110x80xbf16, #tpu.memory_space<vmem>>, vector<1x80x80xbf16>
    %30 = vector.shape_cast %29 : vector<1x80x80xbf16> to vector<80x80xbf16>
    %c5 = arith.constant 5 : index
    %c0_29 = arith.constant 0 : index
    %c0_30 = arith.constant 0 : index
    %31 = vector.load %arg3[%c5, %c0_29, %c0_30] : memref<9x80x64xbf16, #tpu.memory_space<vmem>>, vector<1x80x64xbf16>
    %32 = vector.shape_cast %31 : vector<1x80x64xbf16> to vector<80x64xbf16>
    %cst_31 = arith.constant dense<0.000000e+00> : vector<80x64xf32>
    %33 = tpu.matmul %30, %32, %cst_31 {dimension_numbers = #tpu.dot_dimension_numbers<[1], [0], [0], [1], [0, 0, 1, 1], [], []>} : vector<80x80xbf16>, vector<80x64xbf16>, vector<80x64xf32> -> vector<80x64xf32>
    %34 = arith.addf %28, %33 : vector<80x64xf32>
    %c0_32 = arith.constant 0 : index
    %c20 = arith.constant 20 : index
    %c0_33 = arith.constant 0 : index
    %35 = vector.load %arg2[%c0_32, %c20, %c0_33] : memref<1x110x80xbf16, #tpu.memory_space<vmem>>, vector<1x80x80xbf16>
    %36 = vector.shape_cast %35 : vector<1x80x80xbf16> to vector<80x80xbf16>
    %c6 = arith.constant 6 : index
    %c0_34 = arith.constant 0 : index
    %c0_35 = arith.constant 0 : index
    %37 = vector.load %arg3[%c6, %c0_34, %c0_35] : memref<9x80x64xbf16, #tpu.memory_space<vmem>>, vector<1x80x64xbf16>
    %38 = vector.shape_cast %37 : vector<1x80x64xbf16> to vector<80x64xbf16>
    %cst_36 = arith.constant dense<0.000000e+00> : vector<80x64xf32>
    %39 = tpu.matmul %36, %38, %cst_36 {dimension_numbers = #tpu.dot_dimension_numbers<[1], [0], [0], [1], [0, 0, 1, 1], [], []>} : vector<80x80xbf16>, vector<80x64xbf16>, vector<80x64xf32> -> vector<80x64xf32>
    %40 = arith.addf %34, %39 : vector<80x64xf32>
    %c0_37 = arith.constant 0 : index
    %c21 = arith.constant 21 : index
    %c0_38 = arith.constant 0 : index
    %41 = vector.load %arg2[%c0_37, %c21, %c0_38] : memref<1x110x80xbf16, #tpu.memory_space<vmem>>, vector<1x80x80xbf16>
    %42 = vector.shape_cast %41 : vector<1x80x80xbf16> to vector<80x80xbf16>
    %c7 = arith.constant 7 : index
    %c0_39 = arith.constant 0 : index
    %c0_40 = arith.constant 0 : index
    %43 = vector.load %arg3[%c7, %c0_39, %c0_40] : memref<9x80x64xbf16, #tpu.memory_space<vmem>>, vector<1x80x64xbf16>
    %44 = vector.shape_cast %43 : vector<1x80x64xbf16> to vector<80x64xbf16>
    %cst_41 = arith.constant dense<0.000000e+00> : vector<80x64xf32>
    %45 = tpu.matmul %42, %44, %cst_41 {dimension_numbers = #tpu.dot_dimension_numbers<[1], [0], [0], [1], [0, 0, 1, 1], [], []>} : vector<80x80xbf16>, vector<80x64xbf16>, vector<80x64xf32> -> vector<80x64xf32>
    %46 = arith.addf %40, %45 : vector<80x64xf32>
    %c0_42 = arith.constant 0 : index
    %c22 = arith.constant 22 : index
    %c0_43 = arith.constant 0 : index
    %47 = vector.load %arg2[%c0_42, %c22, %c0_43] : memref<1x110x80xbf16, #tpu.memory_space<vmem>>, vector<1x80x80xbf16>
    %48 = vector.shape_cast %47 : vector<1x80x80xbf16> to vector<80x80xbf16>
    %c8 = arith.constant 8 : index
    %c0_44 = arith.constant 0 : index
    %c0_45 = arith.constant 0 : index
    %49 = vector.load %arg3[%c8, %c0_44, %c0_45] : memref<9x80x64xbf16, #tpu.memory_space<vmem>>, vector<1x80x64xbf16>
    %50 = vector.shape_cast %49 : vector<1x80x64xbf16> to vector<80x64xbf16>
    %cst_46 = arith.constant dense<0.000000e+00> : vector<80x64xf32>
    %51 = tpu.matmul %48, %50, %cst_46 {dimension_numbers = #tpu.dot_dimension_numbers<[1], [0], [0], [1], [0, 0, 1, 1], [], []>} : vector<80x80xbf16>, vector<80x64xbf16>, vector<80x64xf32> -> vector<80x64xf32>
    %52 = arith.addf %46, %51 : vector<80x64xf32>
    %c0_47 = arith.constant 0 : index
    %c0_48 = arith.constant 0 : index
    %53 = vector.load %arg4[%c0_47, %c0_48] : memref<1x64xf32, #tpu.memory_space<vmem>>, vector<1x64xf32>
    %54 = vector.broadcast %53 : vector<1x64xf32> to vector<80x64xf32>
    %55 = arith.addf %52, %54 : vector<80x64xf32>
    %cst_49 = arith.constant 0.000000e+00 : f32
    %56 = vector.broadcast %cst_49 : f32 to vector<80x64xf32>
    %57 = arith.maximumf %55, %56 : vector<80x64xf32>
    %58 = arith.truncf %57 : vector<80x64xf32> to vector<80x64xbf16>
    %59 = vector.extract_strided_slice %58 {offsets = [0, 0], sizes = [8, 64], strides = [1, 1]} : vector<80x64xbf16> to vector<8x64xbf16>
    %c0_50 = arith.constant 0 : index
    %c0_51 = arith.constant 0 : index
    %c0_52 = arith.constant 0 : index
    %60 = vector.load %arg5[%c0_50, %c0_51, %c0_52] : memref<1x64x64xbf16, #tpu.memory_space<vmem>>, vector<1x8x64xbf16>
    %61 = vector.shape_cast %60 : vector<1x8x64xbf16> to vector<8x64xbf16>
    %62 = vector.shape_cast %59 : vector<8x64xbf16> to vector<1x8x64xbf16>
    tpu.vector_store %arg5[%c0_50, %c0_51, %c0_52], %62 {strides = array<i32>} : memref<1x64x64xbf16, #tpu.memory_space<vmem>>, vector<1x8x64xbf16>,
    %63 = vector.extract_strided_slice %58 {offsets = [10, 0], sizes = [8, 64], strides = [1, 1]} : vector<80x64xbf16> to vector<8x64xbf16>
    %c0_53 = arith.constant 0 : index
    %c8_54 = arith.constant 8 : index
    %c0_55 = arith.constant 0 : index
    %64 = vector.load %arg5[%c0_53, %c8_54, %c0_55] : memref<1x64x64xbf16, #tpu.memory_space<vmem>>, vector<1x8x64xbf16>
    %65 = vector.shape_cast %64 : vector<1x8x64xbf16> to vector<8x64xbf16>
    %66 = vector.shape_cast %63 : vector<8x64xbf16> to vector<1x8x64xbf16>
    tpu.vector_store %arg5[%c0_53, %c8_54, %c0_55], %66 {strides = array<i32>} : memref<1x64x64xbf16, #tpu.memory_space<vmem>>, vector<1x8x64xbf16>,
    %67 = vector.extract_strided_slice %58 {offsets = [20, 0], sizes = [8, 64], strides = [1, 1]} : vector<80x64xbf16> to vector<8x64xbf16>
    %c0_56 = arith.constant 0 : index
    %c16 = arith.constant 16 : index
    %c0_57 = arith.constant 0 : index
    %68 = vector.load %arg5[%c0_56, %c16, %c0_57] : memref<1x64x64xbf16, #tpu.memory_space<vmem>>, vector<1x8x64xbf16>
    %69 = vector.shape_cast %68 : vector<1x8x64xbf16> to vector<8x64xbf16>
    %70 = vector.shape_cast %67 : vector<8x64xbf16> to vector<1x8x64xbf16>
    tpu.vector_store %arg5[%c0_56, %c16, %c0_57], %70 {strides = array<i32>} : memref<1x64x64xbf16, #tpu.memory_space<vmem>>, vector<1x8x64xbf16>,
    %71 = vector.extract_strided_slice %58 {offsets = [30, 0], sizes = [8, 64], strides = [1, 1]} : vector<80x64xbf16> to vector<8x64xbf16>
    %c0_58 = arith.constant 0 : index
    %c24 = arith.constant 24 : index
    %c0_59 = arith.constant 0 : index
    %72 = vector.load %arg5[%c0_58, %c24, %c0_59] : memref<1x64x64xbf16, #tpu.memory_space<vmem>>, vector<1x8x64xbf16>
    %73 = vector.shape_cast %72 : vector<1x8x64xbf16> to vector<8x64xbf16>
    %74 = vector.shape_cast %71 : vector<8x64xbf16> to vector<1x8x64xbf16>
    tpu.vector_store %arg5[%c0_58, %c24, %c0_59], %74 {strides = array<i32>} : memref<1x64x64xbf16, #tpu.memory_space<vmem>>, vector<1x8x64xbf16>,
    %75 = vector.extract_strided_slice %58 {offsets = [40, 0], sizes = [8, 64], strides = [1, 1]} : vector<80x64xbf16> to vector<8x64xbf16>
    %c0_60 = arith.constant 0 : index
    %c32 = arith.constant 32 : index
    %c0_61 = arith.constant 0 : index
    %76 = vector.load %arg5[%c0_60, %c32, %c0_61] : memref<1x64x64xbf16, #tpu.memory_space<vmem>>, vector<1x8x64xbf16>
    %77 = vector.shape_cast %76 : vector<1x8x64xbf16> to vector<8x64xbf16>
    %78 = vector.shape_cast %75 : vector<8x64xbf16> to vector<1x8x64xbf16>
    tpu.vector_store %arg5[%c0_60, %c32, %c0_61], %78 {strides = array<i32>} : memref<1x64x64xbf16, #tpu.memory_space<vmem>>, vector<1x8x64xbf16>,
    %79 = vector.extract_strided_slice %58 {offsets = [50, 0], sizes = [8, 64], strides = [1, 1]} : vector<80x64xbf16> to vector<8x64xbf16>
    %c0_62 = arith.constant 0 : index
    %c40 = arith.constant 40 : index
    %c0_63 = arith.constant 0 : index
    %80 = vector.load %arg5[%c0_62, %c40, %c0_63] : memref<1x64x64xbf16, #tpu.memory_space<vmem>>, vector<1x8x64xbf16>
    %81 = vector.shape_cast %80 : vector<1x8x64xbf16> to vector<8x64xbf16>
    %82 = vector.shape_cast %79 : vector<8x64xbf16> to vector<1x8x64xbf16>
    tpu.vector_store %arg5[%c0_62, %c40, %c0_63], %82 {strides = array<i32>} : memref<1x64x64xbf16, #tpu.memory_space<vmem>>, vector<1x8x64xbf16>,
    %83 = vector.extract_strided_slice %58 {offsets = [60, 0], sizes = [8, 64], strides = [1, 1]} : vector<80x64xbf16> to vector<8x64xbf16>
    %c0_64 = arith.constant 0 : index
    %c48 = arith.constant 48 : index
    %c0_65 = arith.constant 0 : index
    %84 = vector.load %arg5[%c0_64, %c48, %c0_65] : memref<1x64x64xbf16, #tpu.memory_space<vmem>>, vector<1x8x64xbf16>
    %85 = vector.shape_cast %84 : vector<1x8x64xbf16> to vector<8x64xbf16>
    %86 = vector.shape_cast %83 : vector<8x64xbf16> to vector<1x8x64xbf16>
    tpu.vector_store %arg5[%c0_64, %c48, %c0_65], %86 {strides = array<i32>} : memref<1x64x64xbf16, #tpu.memory_space<vmem>>, vector<1x8x64xbf16>,
    %87 = vector.extract_strided_slice %58 {offsets = [70, 0], sizes = [8, 64], strides = [1, 1]} : vector<80x64xbf16> to vector<8x64xbf16>
    %c0_66 = arith.constant 0 : index
    %c56 = arith.constant 56 : index
    %c0_67 = arith.constant 0 : index
    %88 = vector.load %arg5[%c0_66, %c56, %c0_67] : memref<1x64x64xbf16, #tpu.memory_space<vmem>>, vector<1x8x64xbf16>
    %89 = vector.shape_cast %88 : vector<1x8x64xbf16> to vector<8x64xbf16>
    %90 = vector.shape_cast %87 : vector<8x64xbf16> to vector<1x8x64xbf16>
    tpu.vector_store %arg5[%c0_66, %c56, %c0_67], %90 {strides = array<i32>} : memref<1x64x64xbf16, #tpu.memory_space<vmem>>, vector<1x8x64xbf16>,
    return
  }
  func.func @transform_0(%arg0: i32, %arg1: i32) -> (i32, i32, i32) {
    %c0_i32 = arith.constant 0 : i32
    %c0_i32_0 = arith.constant 0 : i32
    %c0_i32_1 = arith.constant 0 : i32
    return %arg0, %c0_i32, %c0_i32_0 : i32, i32, i32
  }
  func.func @transform_1(%arg0: i32, %arg1: i32) -> (i32, i32, i32) {
    %c0_i32 = arith.constant 0 : i32
    %c0_i32_0 = arith.constant 0 : i32
    %c0_i32_1 = arith.constant 0 : i32
    %c0_i32_2 = arith.constant 0 : i32
    return %c0_i32, %c0_i32_0, %c0_i32_1 : i32, i32, i32
  }
  func.func @transform_2(%arg0: i32, %arg1: i32) -> (i32, i32) {
    %c0_i32 = arith.constant 0 : i32
    %c0_i32_0 = arith.constant 0 : i32
    %c0_i32_1 = arith.constant 0 : i32
    return %c0_i32, %c0_i32_0 : i32, i32
  }
  func.func @transform_3(%arg0: i32, %arg1: i32) -> (i32, i32, i32) {
    %c0_i32 = arith.constant 0 : i32
    %c0_i32_0 = arith.constant 0 : i32
    return %arg0, %arg1, %c0_i32 : i32, i32, i32
  }
}

</mosaic_0001>

<bundles_post_ra>
// kernel: tile.13
= control target key start
LH: loop header
LB: loop body
LE: loop exit
PB: predicated region body
PF: predicated region fallthrough
CT: control target
= control target key end

     0   :  { %s22_s0 = inlined_call_operand.vmem [shape: f32[8], index: 0, kind: input, shape index: {}]   ;;  %s23_s1 = inlined_call_operand.vmem [shape: f32[8,8], index: 1, kind: output, shape index: {}]  }
   0x1   :  { %v4_v0 = vld [vmem:[%s22_s0] ss:$0 sm:$0xff] }
   0x2   :  { %5 = vst [vmem:[%s23_s1] sm:$0xff] %v4_v0 }

// kernel: tile.14
= control target key start
LH: loop header
LB: loop body
LE: loop exit
PB: predicated region body
PF: predicated region fallthrough
CT: control target
= control target key end

     0   :  { %s69_s10 = smov 56   ;;  %s70_s11 = smov 40   ;;  %vm3_vm0 = vcmask 64512   ;;  %vm9_vm1 = vcmask 523712   ;;  %vm15_vm2 = vcmask 458112   ;;  %vm21_vm3 = vcmask 392512   ;;  %s113_s0 = inlined_call_operand.vmem [shape: f32[8,8], index: 0, kind: input, shape index: {}]   ;;  %s114_s1 = inlined_call_operand.vmem [shape: f32[1,64], index: 1, kind: output, shape index: {}]  }
   0x1   :  { %v55_v0 = vld [vmem:[%s113_s0 + $0x7] sm:$0x1]   ;;  %v57_v1 = vld [vmem:[%s113_s0 + $0x5] sm:$0x1]   ;;  %v56_v2 = vld [vmem:[%s113_s0 + $0x6] sm:$0x1]  }
   0x2   :  { %7 = vrot.lane.b32.xlu0 %v55_v0, %s69_s10  ;;  %19 = vrot.lane.b32.xlu1 %v57_v1, %s70_s11  ;;  %v58_v3 = vld [vmem:[%s113_s0 + $0x4] sm:$0x1]   ;;  %v2_v4 = vld [vmem:[%s113_s0] sm:$0x1]   ;;  %s71_s18 = smov 48   ;;  %s72_s19 = smov 32  }
   0x3   :  { %4 = vst.msk [vmem:[#allocation0] sm:$0x1] %vm3_vm0, %v2_v4   ;;  %v59_v5 = vld [vmem:[%s113_s0 + $0x3] sm:$0x1]   ;;  %v60_v6 = vld [vmem:[%s113_s0 + $0x2] sm:$0x1]  }
   0x4   :  { %s73_s24 = smov 24   ;;  %s74_s25 = smov 16   ;;  %v61_v7 = vld [vmem:[%s113_s0 + $0x1] sm:$0x1]   ;;  %vm27_vm4 = vcmask 326912   ;;  %vm33_vm5 = vcmask 261312  }
   0x5   :  { %s75_s0 = smov 8   ;;  %vm39_vm6 = vcmask 195712   ;;  %vm45_vm7 = vcmask 130112  }
   0x6   :  { %13 = vrot.lane.b32.xlu0 %v56_v2, %s71_s18  ;;  %25 = vrot.lane.b32.xlu1 %v58_v3, %s72_s19 }
   0xa   :  { %31 = vrot.lane.b32.xlu0 %v59_v5, %s73_s24  ;;  %37 = vrot.lane.b32.xlu1 %v60_v6, %s74_s25 }
   0xe   :  { %43 = vrot.lane.b32.xlu0 %v61_v7, %s75_s0 }
  0x74   :  { %v8_v8 = vpop.permute.xlu0 %7   ;;  %v20_v9 = vpop.permute.xlu1 %19  }
  0x75   :  { %10 = vst.msk [vmem:[#allocation0] sm:$0x1] %vm9_vm1, %v8_v8  }
  0x78   :  { %v14_v10 = vpop.permute.xlu0 %13   ;;  %v26_v11 = vpop.permute.xlu1 %25  }
  0x79   :  { %16 = vst.msk [vmem:[#allocation0] sm:$0x1] %vm15_vm2, %v14_v10  }
  0x7a   :  { %22 = vst.msk [vmem:[#allocation0] sm:$0x1] %vm21_vm3, %v20_v9  }
  0x7b   :  { %28 = vst.msk [vmem:[#allocation0] sm:$0x1] %vm27_vm4, %v26_v11  }
  0x7c   :  { %v32_v12 = vpop.permute.xlu0 %31   ;;  %v38_v13 = vpop.permute.xlu1 %37  }
  0x7d   :  { %34 = vst.msk [vmem:[#allocation0] sm:$0x1] %vm33_vm5, %v32_v12  }
  0x7e   :  { %40 = vst.msk [vmem:[#allocation0] sm:$0x1] %vm39_vm6, %v38_v13  }
  0x80   :  { %v44_v14 = vpop.permute.xlu0 %43  }
  0x81   :  { %46 = vst.msk [vmem:[#allocation0] sm:$0x1] %vm45_vm7, %v44_v14  }
  0x88   :  { %v51_v15 = vld [vmem:[#allocation0] sm:$0x1] }
  0x89   :  { %54 = vst [vmem:[%s114_s1] sm:$0x1] %v51_v15 }

// kernel: conv_block_forward.2
= control target key start
LH: loop header
LB: loop body
LE: loop exit
PB: predicated region body
PF: predicated region fallthrough
CT: control target
= control target key end

     0   :  { %s2408_s12 = smov 0   ;;  %s2410_s13 = smov 0   ;;  %s2999_s0 = inlined_call_operand.vmem [shape: bf16[2,110,40], index: 0, kind: input, shape index: {}]   ;;  %s3000_s1 = inlined_call_operand.vmem [shape: bf16[9,40,64], index: 1, kind: input, shape index: {}]   ;;  %s3001_s2 = inlined_call_operand.vmem [shape: f32[1,64], index: 2, kind: input, shape index: {}]   ;;  %s3002_s3 = inlined_call_operand.vmem [shape: bf16[2,64,64], index: 3, kind: output, shape index: {}]  }
   0x1   :  { %s2412_s14 = smov 0  }
   0x2 LB: > { %s25_s15 = sadd.s32 1, %s2380_s13  ;;  %p1806_p0 = scmp.ge.s32.totalorder %s2384_s14, 1  ;;  %s2384_s14 = sphi %s2412_s14, %s13_s14   ;;  %s2380_s13 = sphi %s2410_s13, %s3010_s13   ;;  %s2376_s12 = sphi %s2408_s12, %s3009_s12  }
   0x3   : > { %p27_p1 = scmp.ge.s32.totalorder %s25_s15, 2  ;;  %p151_p2 = scmp.lt.s32.totalorder %s2384_s14, 3 }
   0x5   : > { %s3012_s15 = smov (%p27_p1, %s25_s15), 0  ;;  %p152_p3 = pnand %p1806_p0, %p151_p2 }
   0x6   : > { %p179_p4 = scmp.lt.s32.totalorder (!%p152_p3), %s2376_s12, 1 }
   0x7   : > { %155 = sbr.rel (%p152_p3) target bundleno = 413 (0x19d), region = 32 }
   0xc   : > { %v2312_v0 = vld [vmem:[%s3000_s1 + $0x24] ss:$0 sps:$4 sm:$0xff]   ;;  %vm321_vm0 = vcmask 1043456   ;;  %v2386_v1 = vmov 0.0   ;;  %vm2387_vm1 = vmmov 0   ;;  %v2313_v3 = vld [vmem:[%s3000_s1 + $0x1c] sm:$0xff]  }
   0xd   : > { %2279 = vmatprep.subr.bf16.mxu1 %v2386_v1  ;;  %2045 = vmatprep.subr.bf16.mxu0 %v2386_v1  ;;  %v323_v2 = vsel %vm321_vm0, %v2312_v0, 0  ;;  %s3014_s12 = smov (!%p179_p4, %s2376_s12), 1  ;;  %v2314_v4 = vld [vmem:[%s3000_s1 + $0x14] sm:$0xff]   ;;  %v2317_v7 = vld [vmem:[%s3000_s1 + $0x10] ss:$0 sps:$4 sm:$0xff]   ;;  %vm305_vm3 = vcmask 326656  }
   0xe   : > { %2059 = vmatprep.mubr.msk.bf16.mxu1 %vm2387_vm1, %v2386_v1  ;;  %2051 = vmatprep.mubr.msk.bf16.mxu0 %vm2387_vm1, %v2386_v1  ;;  %s2285_s22 = smul.u32 56, %s3014_s12  ;;  %vm245_vm2 = vsmask.f32 7424  ;;  %v2322_v21 = vld [vmem:[%s3000_s1 + $0x38] ss:$0 sps:$4 sm:$0xff]   ;;  %v424_v26 = vsel %vm321_vm0, %v2317_v7, 0 }
   0xf   : > { %2282 = vmatpush3.bf16.msra.mxu1 %v323_v2  ;;  %2046 = vmatpush3.bf16.msra.mxu0 %v323_v2  ;;  %v552_v32 = vsel %vm321_vm0, %v2322_v21, 0  ;;  %v2321_v36 = vld [vmem:[%s3000_s1 + $0x8] sm:$0xff]   ;;  %v2323_v38 = vld [vmem:[%s3000_s1 + $0x30] sm:$0xff]   ;;  %v2325_v43 = vld [vmem:[%s3000_s1] sm:$0xff]   ;;  %vm509_vm4 = vcmask 1046528   ;;  %vm999_vm6 = vcmask 1045504  }
  0x10   : > { %2280 = vmatprep.subr.bf16.mxu1 %v2386_v1  ;;  %2047 = vmatprep.subr.bf16.mxu0 %v2386_v1  ;;  %s2452_s25 = scalar_lea.vmem %s2999_s0, %s2285_s22  ;;  %v2326_v45 = vld [vmem:[%s3000_s1 + $0x28] sm:$0xff]   ;;  %v2329_v51 = vld [vmem:[%s3000_s1 + $0x60] ss:$0 sps:$4 sm:$0xff]   ;;  %v2331_v62 = vld [vmem:[%s3000_s1 + $0x58] sm:$0xff]   ;;  %vm819_vm5 = vsmask.f32 6400 }
  0x11   : > { %v2455_v5 = vld [vmem:[%s2452_s25 + $0x10] sm:$0xff]   ;;  %v2458_v6 = vld [vmem:[%s2452_s25 + $0x18] sm:$0xff]   ;;  %v195_v8 = vld [vmem:[%s2452_s25] sm:$0xf]  ;;  %v904_v56 = vsel %vm321_vm0, %v2329_v51, 0  ;;  %vm1489_vm7 = vcmask 1044480  }
  0x12   : > { %v196_v9 = vld [vmem:[%s2452_s25 + $0x4] sm:$0xf]  ;;  %v262_v10 = vshll.u32 %v2455_v5, 16  ;;  %v266_v11 = vshrl.u32 %v2455_v5, 16  ;;  %v270_v12 = vshll.u32 %v2458_v6, 16  ;;  %v2473_v14 = vld [vmem:[%s2452_s25 + $0x8] sm:$0xff]  }
  0x13   : > { %2283 = vmatpush3.bf16.msra.mxu1 %v2313_v3  ;;  %2048 = vmatpush3.bf16.msra.mxu0 %v2313_v3  ;;  %v2470_v13 = vcombine.low %v195_v8, %v196_v9  ;;  %v2476_v15 = vld [vmem:[%s2452_s25 + $0x20] sm:$0xff]   ;;  %v254_v20 = vshll.u32 %v2473_v14, 16  ;;  %v274_v24 = vshrl.u32 %v2458_v6, 16  ;;  %v258_v30 = vshrl.u32 %v2473_v14, 16  ;;  %v2328_v59 = vld [vmem:[%s3000_s1 + $0x4c] ss:$0 sps:$4 sm:$0xff]  }
  0x14   : > { %2281 = vmatprep.subr.bf16.mxu1 %v2386_v1  ;;  %2049 = vmatprep.subr.bf16.mxu0 %v2386_v1  ;;  %v264_v16 = vrot.slane %v262_v10, 1  ;;  %v272_v17 = vrot.slane %v270_v12, 1  ;;  %v278_v25 = vshll.u32 %v2476_v15, 16  ;;  %v2490_v31 = vld [vmem:[%s2452_s25 + $0x28] ss:$0 sps:$4 sm:$0x11]  }
  0x15   : > { %v247_v18 = vshrl.u32 %v2470_v13, 16  ;;  %v249_v19 = vshll.u32 %v2470_v13, 16  ;;  %v256_v27 = vrot.slane %v254_v20, 1  ;;  %v499_v39 = vld [vmem:[%s2452_s25] sm:$0xe]  ;;  %v282_v41 = vshrl.u32 %v2476_v15, 16 }
  0x16   : > { %v268_v22 = vor.u32 %v266_v11, %v264_v16  ;;  %v276_v34 = vor.u32 %v274_v24, %v272_v17  ;;  %v280_v35 = vrot.slane %v278_v25, 1  ;;  %v286_v42 = vshll.u32 %v2490_v31, 16  ;;  %v2535_v53 = vld [vmem:[%s2452_s25 + $0x1c] sm:$0xff]   ;;  %v2538_v54 = vld [vmem:[%s2452_s25 + $0x24] sm:$0xff]   ;;  %s1963_s4 = sshll.u32 %s3014_s12, 5 }
  0x17   : > { %2284 = vmatpush3.bf16.msra.mxu1 %v2314_v4  ;;  %2050 = vmatpush3.bf16.msra.mxu0 %v2314_v4  ;;  %v251_v23 = vrot.slane %v249_v19, 1  ;;  %v260_v37 = vor.u32 %v258_v30, %v256_v27  ;;  %v1842_v46 = vcombine.low %v499_v39, %v196_v9  ;;  %v511_v50 = vrot.slane %v2473_v14, 1  ;;  %v2346_v63 = vld [vmem:[%s2452_s25 + $0x2c] ss:$0 sps:$4 sm:$0x11]   ;;  %v2333_v4 = vld [vmem:[%s3000_s1 + $0x50] sm:$0xff]   ;;  %s2920_s7 = scalar_lea.vmem %s3002_s3, %s1963_s4 }
  0x18   : > { %2071 = vmatprep.subr.bf16.mxu1 %v2386_v1  ;;  %2097 = vmatprep.subr.bf16.mxu0 %v2386_v1  ;;  %v273_v28 = vsel %vm245_vm2, %v268_v22, %v272_v17  ;;  %v281_v40 = vsel %vm245_vm2, %v276_v34, %v280_v35  ;;  %v284_v47 = vor.u32 %v282_v41, %v280_v35  ;;  %v288_v48 = vrot.slane %v286_v42, 1  ;;  %v2330_v8 = vld [vmem:[%s3000_s1 + $0x44] sm:$0xff]   ;;  %v2332_v10 = vld [vmem:[%s3000_s1 + $0x3c] sm:$0xff]   ;;  %v2336_v39 = vld [vmem:[%s3000_s1 + $0x74] ss:$0 sps:$4 sm:$0xff]  }
  0x19   : > { %v252_v29 = vor.u32 %v251_v23, %v247_v18  ;;  %v265_v44 = vsel %vm245_vm2, %v260_v37, %v264_v16  ;;  %v510_v49 = vrot.slane %v1842_v46, 1  ;;  %v687_v57 = vrot.slane %v2535_v53, 1  ;;  %v2602_v16 = vld [vmem:[%s2452_s25 + $0x8] sm:$0xf]  ;;  %v2607_v18 = vld [vmem:[%s2452_s25 + $0xc] sm:$0xff]   ;;  %v2341_v42 = vld [vmem:[%s3000_s1 + $0x80] sm:$0xff]  }
  0x1a   : > { %2060 = vmatmul.mubr.msk.bf16.vlgmr.msra.gmra.mxu1 %vm305_vm3, %v273_v28  ;;  %v289_v52 = vsel %vm245_vm2, %v284_v47, %v288_v48  ;;  %v689_v58 = vrot.slane %v2538_v54, 1  ;;  %v513_v61 = vrot.slane %v2455_v5, 1  ;;  %v691_v0 = vrot.slane %v2346_v63, 1  ;;  %v2621_v28 = vld [vmem:[%s2452_s25 + $0x14] sm:$0xff]  }
  0x1b   : > { %2072 = vmatpush3.bf16.msra.mxu1 %v424_v26  ;;  %v257_v33 = vsel %vm245_vm2, %v252_v29, %v256_v27  ;;  %2063 = vmatprep.mubr.msk.bf16.mxu1 %vm2387_vm1, %v2386_v1  ;;  %v512_v55 = vsel %vm509_vm4, %v510_v49, %v511_v50  ;;  %v724_v2 = vsel %vm321_vm0, %v2328_v59, 0  ;;  %v515_v9 = vrot.slane %v2458_v6, 1  ;;  %v2345_v48 = vld [vmem:[%s3000_s1 + $0x78] sm:$0xff]   ;;  %v2682_v63 = vld [vmem:[%s2452_s25 + $0x2c] ss:$0 sps:$4 sm:$0x33]  }
  0x1c   : > { %2052 = vmatmul.mubr.msk.bf16.vlgmr.msra.gmra.mxu0 %vm305_vm3, %v257_v33  ;;  %2073 = vmatprep.subr.bf16.mxu1 %v2386_v1  ;;  %v2554_v60 = vsel %vm509_vm4, %v687_v57, %v689_v58  ;;  %v514_v3 = vsel %vm509_vm4, %v511_v50, %v513_v61  ;;  %v2570_v7 = vsel %vm509_vm4, %v689_v58, %v691_v0  ;;  %v517_v12 = vrot.slane %v2476_v15, 1  ;;  %v2337_v33 = vld [vmem:[%s3000_s1 + $0x88] ss:$0 sps:$4 sm:$0xff]   ;;  %v2340_v50 = vld [vmem:[%s3000_s1 + $0x6c] sm:$0xff]  }
  0x1d   : > { %2098 = vmatpush3.bf16.msra.mxu0 %v552_v32  ;;  %2055 = vmatprep.mubr.msk.bf16.mxu0 %vm2387_vm1, %v2386_v1  ;;  %v516_v11 = vsel %vm509_vm4, %v513_v61, %v515_v9  ;;  %v519_v19 = vrot.slane %v2490_v31, 1  ;;  %v829_v22 = vshrl.u32 %v2607_v18, 16  ;;  %v832_v23 = vshll.u32 %v2607_v18, 16  ;;  %v2343_v58 = vld [vmem:[%s3000_s1 + $0x64] sm:$0xff]  }
  0x1e   : > { %2099 = vmatprep.subr.bf16.mxu0 %v2386_v1  ;;  %v518_v17 = vsel %vm509_vm4, %v515_v9, %v517_v12  ;;  %v838_v31 = vshrl.u32 %v2621_v28, 16  ;;  %v841_v32 = vshll.u32 %v2621_v28, 16  ;;  %v850_v41 = vshll.u32 %v2535_v53, 16 }
  0x1f   : > { %2074 = vmatpush3.bf16.msra.mxu1 %v2321_v36  ;;  %v520_v24 = vsel %vm509_vm4, %v517_v12, %v519_v19  ;;  %v831_v26 = vrot.slane %v829_v22, 1  ;;  %v834_v27 = vrot.slane %v832_v23, 2  ;;  %v1214_v36 = vsel %vm321_vm0, %v2337_v33, 0  ;;  %v1127_v12 = vld [vmem:[%s2452_s25 + $0x8] sm:$0xc] }
  0x20   : > { %2075 = vmatprep.subr.bf16.mxu1 %v2386_v1  ;;  %v840_v34 = vrot.slane %v838_v31, 1  ;;  %v843_v35 = vrot.slane %v841_v32, 2  ;;  %v852_v47 = vrot.slane %v850_v41, 2  ;;  %v685_v49 = vrot.slane %v2621_v28, 1  ;;  %v989_v19 = vld [vmem:[%s2452_s25 + $0x4] sm:$0xc] }
  0x21   : > { %2100 = vmatpush3.bf16.msra.mxu0 %v2323_v38  ;;  %v835_v30 = vor.u32 %v834_v27, %v831_v26  ;;  %v683_v38 = vrot.slane %v2607_v18, 1  ;;  %v2351_v22 = vld [vmem:[%s3000_s1 + $0xb0] ss:$0 sps:$4 sm:$0xff]   ;;  %v1001_v26 = vrot.slane %v2607_v18, 2  ;;  %v2355_v27 = vld [vmem:[%s3000_s1 + $0xa8] sm:$0xff]   ;;  %v2753_v31 = vld [vmem:[%s2452_s25 + $0x20] sm:$0xff]  }
  0x22   : > { %2064 = vmatmul.mubr.msk.bf16.gmra.mxu1 %vm305_vm3, %v281_v40  ;;  %2101 = vmatprep.subr.bf16.mxu0 %v2386_v1  ;;  %v844_v40 = vor.u32 %v843_v35, %v840_v34  ;;  %v2359_v32 = vld [vmem:[%s3000_s1 + $0xa0] sm:$0xff]   ;;  %v1003_v33 = vrot.slane %v2621_v28, 2  ;;  %v1177_v34 = vrot.slane %v2753_v31, 2  ;;  %v2357_v28 = vld [vmem:[%s3000_s1 + $0x8c] sm:$0xff]   ;;  %vm1309_vm8 = vsmask.f32 5376 }
  0x23   : > { %2067 = vmatprep.mubr.msk.bf16.mxu1 %vm2387_vm1, %v2386_v1  ;;  %2076 = vmatpush3.bf16.msra.mxu1 %v2325_v43  ;;  %v2358_v41 = vld [vmem:[%s2452_s25 + $0x30] ss:$0 sps:$4 sm:$0x33]   ;;  %vm1649_vm9 = vcmask 519168   ;;  %vm1657_vm10 = vcmask 1042432   ;;  %vm1658_vm11 = vcmask 1046532  }
  0x24   : > { %2056 = vmatmul.mubr.msk.bf16.gmra.mxu0 %vm305_vm3, %v265_v44  ;;  %2123 = vmatprep.subr.bf16.mxu1 %v2386_v1  ;;  %v1042_v44 = vsel %vm321_vm0, %v2336_v39, 0  ;;  %v1004_v35 = vsel %vm999_vm6, %v1001_v26, %v1003_v33  ;;  %vm2931_vm12 = vmor %vm1657_vm10, %vm1658_vm11  ;;  %vm1668_vm13 = vcmask 1041408   ;;  %vm1669_vm14 = vcmask 1045508  }
  0x25   : > { %2102 = vmatpush3.bf16.msra.mxu0 %v2326_v45  ;;  %2103 = vmatprep.mubr.msk.bf16.mxu0 %vm2387_vm1, %v2386_v1  ;;  %v845_v45 = vsel %vm819_vm5, %v835_v30, %v844_v40  ;;  %vm2945_vm15 = vmor %vm1668_vm13, %vm1669_vm14 }
  0x26   : > { %2149 = vmatprep.subr.bf16.mxu0 %v2386_v1 }
  0x2a   : > { %2068 = vmatmul.mubr.msk.bf16.gmra.mxu1 %vm305_vm3, %v289_v52  ;;  %v856_v52 = vshrl.u32 %v2538_v54, 16 }
  0x2b   : > { %2077 = vmatprep.mubr.msk.bf16.mxu1 %vm2387_vm1, %v2386_v1 }
  0x2c   : > { %2104 = vmatmul.mubr.msk.bf16.vlgmr.msra.gmra.mxu0 %vm305_vm3, %v512_v55  ;;  %v859_v55 = vshll.u32 %v2538_v54, 16  ;;  %v858_v61 = vrot.slane %v856_v52, 1 }
  0x2d   : > { %2150 = vmatpush3.bf16.msra.mxu0 %v904_v56  ;;  %2107 = vmatprep.mubr.msk.bf16.mxu0 %vm2387_vm1, %v2386_v1  ;;  %v686_v56 = vsel %vm509_vm4, %v683_v38, %v685_v49 }
  0x2e   : > { %2151 = vmatprep.subr.bf16.mxu0 %v2386_v1 }
  0x31   : > { %2152 = vmatpush3.bf16.msra.mxu0 %v2331_v62  ;;  %v861_v62 = vrot.slane %v859_v55, 2 }
  0x32   : > { %2078 = vmatmul.mubr.msk.bf16.vlgmr.msra.gmra.mxu1 %vm305_vm3, %v2470_v13  ;;  %2153 = vmatprep.subr.bf16.mxu0 %v2386_v1  ;;  %v637_v13 = vld [vmem:[%s2452_s25 + $0x4] sm:$0xe] }
  0x33   : > { %2124 = vmatpush3.bf16.msra.mxu1 %v724_v2  ;;  %2081 = vmatprep.mubr.msk.bf16.mxu1 %vm2387_vm1, %v2386_v1  ;;  %v862_v0 = vor.u32 %v861_v62, %v858_v61  ;;  %v865_v2 = vshrl.u32 %v2682_v63, 16 }
  0x34   : > { %2108 = vmatmul.mubr.msk.bf16.gmra.mxu0 %vm305_vm3, %v514_v3  ;;  %2125 = vmatprep.subr.bf16.mxu1 %v2386_v1  ;;  %v868_v3 = vshll.u32 %v2682_v63, 16 }
  0x35   : > { %2111 = vmatprep.mubr.msk.bf16.mxu0 %vm2387_vm1, %v2386_v1  ;;  %2154 = vmatpush3.bf16.msra.mxu0 %v2333_v4  ;;  %v688_v4 = vsel %vm509_vm4, %v685_v49, %v687_v57  ;;  %v867_v9 = vrot.slane %v865_v2, 1 }
  0x36   : > { %2201 = vmatprep.subr.bf16.mxu0 %v2386_v1 }
  0x37   : > { %2126 = vmatpush3.bf16.msra.mxu1 %v2330_v8 }
  0x38   : > { %2127 = vmatprep.subr.bf16.mxu1 %v2386_v1 }
  0x3a   : > { %2082 = vmatmul.mubr.msk.bf16.gmra.mxu1 %vm305_vm3, %v2473_v14  ;;  %v1856_v14 = vcombine.low %v637_v13, %v2602_v16  ;;  %v2705_v13 = vld [vmem:[%s2452_s25 + $0xc] sm:$0xf] }
  0x3b   : > { %2085 = vmatprep.mubr.msk.bf16.mxu1 %vm2387_vm1, %v2386_v1  ;;  %2128 = vmatpush3.bf16.msra.mxu1 %v2332_v10  ;;  %v870_v10 = vrot.slane %v868_v3, 2 }
  0x3c   : > { %2112 = vmatmul.mubr.msk.bf16.gmra.mxu0 %vm305_vm3, %v516_v11  ;;  %2175 = vmatprep.subr.bf16.mxu1 %v2386_v1  ;;  %v821_v20 = vshrl.u32 %v1856_v14, 16  ;;  %v824_v21 = vshll.u32 %v1856_v14, 16  ;;  %v682_v37 = vrot.slane %v1856_v14, 1  ;;  %v2712_v14 = vld [vmem:[%s2452_s25 + $0x10] sm:$0xff]  }
  0x3d   : > { %2115 = vmatprep.mubr.msk.bf16.mxu0 %vm2387_vm1, %v2386_v1  ;;  %v871_v11 = vor.u32 %v870_v10, %v867_v9  ;;  %v1319_v49 = vshrl.u32 %v2712_v14, 16  ;;  %v1491_v52 = vrot.slane %v2712_v14, 3 }
  0x3e   : > { %v823_v25 = vrot.slane %v821_v20, 1  ;;  %v684_v43 = vsel %vm509_vm4, %v682_v37, %v683_v38  ;;  %v2778_v37 = vld [vmem:[%s2452_s25 + $0x28] sm:$0xff]   ;;  %v1005_v38 = vrot.slane %v2535_v53, 2 }
  0x3f   : > { %v872_v57 = vsel %vm819_vm5, %v862_v0, %v871_v11  ;;  %v1179_v39 = vrot.slane %v2778_v37, 2 }
  0x42   : > { %2086 = vmatmul.mubr.msk.bf16.gmra.mxu1 %vm305_vm3, %v2455_v5  ;;  %v826_v5 = vrot.slane %v824_v21, 2  ;;  %v1173_v21 = vrot.slane %v2712_v14, 2 }
  0x43   : > { %2089 = vmatprep.mubr.msk.bf16.mxu1 %vm2387_vm1, %v2386_v1 }
  0x44   : > { %2116 = vmatmul.mubr.msk.bf16.gmra.mxu0 %vm305_vm3, %v518_v17  ;;  %v827_v29 = vor.u32 %v826_v5, %v823_v25  ;;  %v2709_v17 = vcombine.low %v1127_v12, %v2705_v13  ;;  %v1532_v25 = vsel %vm321_vm0, %v2351_v22, 0 }
  0x45   : > { %2119 = vmatprep.mubr.msk.bf16.mxu0 %vm2387_vm1, %v2386_v1 }
  0x46   : > { %v1172_v20 = vrot.slane %v2709_v17, 2 }
  0x48   : > { %v1174_v23 = vsel %vm999_vm6, %v1172_v20, %v1173_v21 }
  0x4a   : > { %2090 = vmatmul.mubr.msk.bf16.gmra.mxu1 %vm305_vm3, %v2458_v6  ;;  %v836_v6 = vsel %vm819_vm5, %v827_v29, %v835_v30 }
  0x4b   : > { %2093 = vmatprep.mubr.msk.bf16.mxu1 %vm2387_vm1, %v2386_v1 }
  0x4c   : > { %2120 = vmatmul.mubr.msk.bf16.gmra.mxu0 %vm305_vm3, %v520_v24  ;;  %v2730_v24 = vld [vmem:[%s2452_s25 + $0x18] sm:$0xff]  }
  0x4d   : > { %2155 = vmatprep.mubr.msk.bf16.mxu0 %vm2387_vm1, %v2386_v1  ;;  %v1328_v2 = vshrl.u32 %v2730_v24, 16  ;;  %v1331_v3 = vshll.u32 %v2730_v24, 16 }
  0x4f   : > { %v1330_v9 = vrot.slane %v1328_v2, 2  ;;  %v1333_v10 = vrot.slane %v1331_v3, 3 }
  0x51   : > { %v1334_v12 = vor.u32 %v1333_v10, %v1330_v9 }
  0x52   : > { %2094 = vmatmul.mubr.msk.bf16.gmra.mxu1 %vm305_vm3, %v2476_v15  ;;  %v847_v15 = vshrl.u32 %v2535_v53, 16  ;;  %v1007_v53 = vrot.slane %v2538_v54, 2  ;;  %v1311_v54 = vshrl.u32 %v2709_v17, 16 }
  0x53   : > { %2129 = vmatprep.mubr.msk.bf16.mxu1 %vm2387_vm1, %v2386_v1 }
  0x54   : > { %2156 = vmatmul.mubr.msk.bf16.vlgmr.msra.gmra.mxu0 %vm305_vm3, %v836_v6  ;;  %v849_v46 = vrot.slane %v847_v15, 1  ;;  %v2354_v6 = vld [vmem:[%s3000_s1 + $0x94] sm:$0xff]   ;;  %v1180_v15 = vsel %vm999_vm6, %v1177_v34, %v1179_v39 }
  0x55   : > { %2202 = vmatpush3.bf16.msra.mxu0 %v1214_v36  ;;  %2159 = vmatprep.mubr.msk.bf16.mxu0 %vm2387_vm1, %v2386_v1 }
  0x56   : > { %2203 = vmatprep.subr.bf16.mxu0 %v2386_v1  ;;  %v853_v51 = vor.u32 %v852_v47, %v849_v46  ;;  %v1009_v47 = vrot.slane %v2682_v63, 2 }
  0x58   : > { %v854_v59 = vsel %vm819_vm5, %v844_v40, %v853_v51  ;;  %v863_v8 = vsel %vm819_vm5, %v853_v51, %v862_v0  ;;  %v1006_v40 = vsel %vm999_vm6, %v1003_v33, %v1005_v38  ;;  %v1010_v55 = vsel %vm999_vm6, %v1007_v53, %v1009_v47 }
  0x59   : > { %2204 = vmatpush3.bf16.msra.mxu0 %v2341_v42  ;;  %v1181_v42 = vrot.slane %v2358_v41, 2 }
  0x5a   : > { %2130 = vmatmul.mubr.msk.bf16.vlgmr.msra.gmra.mxu1 %vm305_vm3, %v684_v43  ;;  %2205 = vmatprep.subr.bf16.mxu0 %v2386_v1  ;;  %v1479_v43 = vld [vmem:[%s2452_s25 + $0x8] sm:$0x8] }
  0x5b   : > { %2176 = vmatpush3.bf16.msra.mxu1 %v1042_v44  ;;  %2133 = vmatprep.mubr.msk.bf16.mxu1 %vm2387_vm1, %v2386_v1  ;;  %v1008_v44 = vsel %vm999_vm6, %v1005_v38, %v1007_v53  ;;  %v1936_v46 = vcombine.low %v1479_v43, %v2705_v13  ;;  %v1337_v13 = vshrl.u32 %v2753_v31, 16 }
  0x5c   : > { %2160 = vmatmul.mubr.msk.bf16.gmra.mxu0 %vm305_vm3, %v845_v45  ;;  %2177 = vmatprep.subr.bf16.mxu1 %v2386_v1  ;;  %v1182_v45 = vsel %vm999_vm6, %v1179_v39, %v1181_v42 }
  0x5d   : > { %2163 = vmatprep.mubr.msk.bf16.mxu0 %vm2387_vm1, %v2386_v1  ;;  %2206 = vmatpush3.bf16.msra.mxu0 %v2345_v48  ;;  %v1314_v48 = vshll.u32 %v2709_v17, 16  ;;  %v1490_v51 = vrot.slane %v1936_v46, 3  ;;  %v1495_v17 = vrot.slane %v2753_v31, 3 }
  0x5e   : > { %2253 = vmatprep.subr.bf16.mxu0 %v2386_v1 }
  0x5f   : > { %2178 = vmatpush3.bf16.msra.mxu1 %v2340_v50  ;;  %v1322_v50 = vshll.u32 %v2712_v14, 16  ;;  %v1492_v62 = vsel %vm1489_vm7, %v1490_v51, %v1491_v52 }
  0x60   : > { %2179 = vmatprep.subr.bf16.mxu1 %v2386_v1 }
  0x61   : > { %v1324_v61 = vrot.slane %v1322_v50, 3 }
  0x62   : > { %2134 = vmatmul.mubr.msk.bf16.gmra.mxu1 %vm305_vm3, %v686_v56  ;;  %v1313_v56 = vrot.slane %v1311_v54, 2 }
  0x63   : > { %2137 = vmatprep.mubr.msk.bf16.mxu1 %vm2387_vm1, %v2386_v1  ;;  %2180 = vmatpush3.bf16.msra.mxu1 %v2343_v58  ;;  %v1316_v58 = vrot.slane %v1314_v48, 3 }
  0x64   : > { %2164 = vmatmul.mubr.msk.bf16.gmra.mxu0 %vm305_vm3, %v854_v59  ;;  %2227 = vmatprep.subr.bf16.mxu1 %v2386_v1  ;;  %v1321_v59 = vrot.slane %v1319_v49, 2 }
  0x65   : > { %2167 = vmatprep.mubr.msk.bf16.mxu0 %vm2387_vm1, %v2386_v1  ;;  %v1317_v63 = vor.u32 %v1316_v58, %v1313_v56 }
  0x66   : > { %v1325_v0 = vor.u32 %v1324_v61, %v1321_v59 }
  0x68   : > { %v1335_v14 = vsel %vm1309_vm8, %v1325_v0, %v1334_v12 }
  0x6a   : > { %2138 = vmatmul.mubr.msk.bf16.gmra.mxu1 %vm305_vm3, %v688_v4  ;;  %v1493_v4 = vrot.slane %v2730_v24, 3 }
  0x6b   : > { %2141 = vmatprep.mubr.msk.bf16.mxu1 %vm2387_vm1, %v2386_v1 }
  0x6c   : > { %2168 = vmatmul.mubr.msk.bf16.gmra.mxu0 %vm305_vm3, %v863_v8  ;;  %v1326_v8 = vsel %vm1309_vm8, %v1317_v63, %v1325_v0  ;;  %v1494_v11 = vsel %vm1489_vm7, %v1491_v52, %v1493_v4 }
  0x6d   : > { %2171 = vmatprep.mubr.msk.bf16.mxu0 %vm2387_vm1, %v2386_v1 }
  0x72   : > { %2142 = vmatmul.mubr.msk.bf16.gmra.mxu1 %vm305_vm3, %v2554_v60  ;;  %v1889_v60 = vcombine.low %v989_v19, %v2602_v16  ;;  %v2350_v16 = vld [vmem:[%s3000_s1 + $0x9c] ss:$0 sps:$4 sm:$0xff]   ;;  %v1339_v19 = vrot.slane %v1337_v13, 2 }
  0x73   : > { %2145 = vmatprep.mubr.msk.bf16.mxu1 %vm2387_vm1, %v2386_v1  ;;  %v1394_v29 = vsel %vm321_vm0, %v2350_v16, 0  ;;  %v2361_v16 = vld [vmem:[%s2452_s25 + $0x30] ss:$0 sps:$4 sm:$0x77]   ;;  %vm1680_vm0 = vcmask 1040384  }
  0x74   : > { %2172 = vmatmul.mubr.msk.bf16.gmra.mxu0 %vm305_vm3, %v872_v57  ;;  %v1000_v5 = vrot.slane %v1889_v60, 2  ;;  %v1340_v57 = vshll.u32 %v2753_v31, 16  ;;  %v1346_v60 = vshrl.u32 %v2778_v37, 16 }
  0x75   : > { %2207 = vmatprep.mubr.msk.bf16.mxu0 %vm2387_vm1, %v2386_v1 }
  0x76   : > { %v1002_v18 = vsel %vm999_vm6, %v1000_v5, %v1001_v26  ;;  %v1342_v20 = vrot.slane %v1340_v57, 3  ;;  %v1348_v5 = vrot.slane %v1346_v60, 2 }
  0x78   : > { %v1343_v22 = vor.u32 %v1342_v20, %v1339_v19 }
  0x7a   : > { %2146 = vmatmul.mubr.msk.bf16.gmra.mxu1 %vm305_vm3, %v2570_v7  ;;  %v1175_v7 = vrot.slane %v2730_v24, 2  ;;  %v1497_v24 = vrot.slane %v2778_v37, 3 }
  0x7b   : > { %2181 = vmatprep.mubr.msk.bf16.mxu1 %vm2387_vm1, %v2386_v1 }
  0x7c   : > { %2208 = vmatmul.mubr.msk.bf16.vlgmr.msra.gmra.mxu0 %vm305_vm3, %v1174_v23  ;;  %v1176_v30 = vsel %vm999_vm6, %v1173_v21, %v1175_v7  ;;  %v1178_v36 = vsel %vm999_vm6, %v1175_v7, %v1177_v34  ;;  %v1496_v21 = vsel %vm1489_vm7, %v1493_v4, %v1495_v17  ;;  %v1349_v23 = vshll.u32 %v2778_v37, 16 }
  0x7d   : > { %2254 = vmatpush3.bf16.msra.mxu0 %v1532_v25  ;;  %2211 = vmatprep.mubr.msk.bf16.mxu0 %vm2387_vm1, %v2386_v1  ;;  %v1344_v25 = vsel %vm1309_vm8, %v1334_v12, %v1343_v22  ;;  %v1498_v7 = vsel %vm1489_vm7, %v1495_v17, %v1497_v24 }
  0x7e   : > { %2255 = vmatprep.subr.bf16.mxu0 %v2386_v1  ;;  %v1351_v26 = vrot.slane %v1349_v23, 3 }
  0x81   : > { %2256 = vmatpush3.bf16.msra.mxu0 %v2355_v27  ;;  %v1352_v27 = vor.u32 %v1351_v26, %v1348_v5 }
  0x82   : > { %2182 = vmatmul.mubr.msk.bf16.vlgmr.msra.gmra.mxu1 %vm305_vm3, %v1002_v18  ;;  %2257 = vmatprep.subr.bf16.mxu0 %v2386_v1  ;;  %v1355_v18 = vshrl.u32 %v2361_v16, 16 }
  0x83   : > { %2228 = vmatpush3.bf16.msra.mxu1 %v1394_v29  ;;  %2185 = vmatprep.mubr.msk.bf16.mxu1 %vm2387_vm1, %v2386_v1  ;;  %v1358_v29 = vshll.u32 %v2361_v16, 16  ;;  %v1353_v31 = vsel %vm1309_vm8, %v1343_v22, %v1352_v27 }
  0x84   : > { %2212 = vmatmul.mubr.msk.bf16.gmra.mxu0 %vm305_vm3, %v1176_v30  ;;  %2229 = vmatprep.subr.bf16.mxu1 %v2386_v1  ;;  %v1499_v30 = vrot.slane %v2361_v16, 3 }
  0x85   : > { %2215 = vmatprep.mubr.msk.bf16.mxu0 %vm2387_vm1, %v2386_v1  ;;  %2258 = vmatpush3.bf16.msra.mxu0 %v2359_v32  ;;  %v1357_v32 = vrot.slane %v1355_v18, 2  ;;  %v1360_v33 = vrot.slane %v1358_v29, 3 }
  0x87   : > { %2230 = vmatpush3.bf16.msra.mxu1 %v2354_v6  ;;  %v1500_v6 = vsel %vm1489_vm7, %v1497_v24, %v1499_v30  ;;  %v1361_v34 = vor.u32 %v1360_v33, %v1357_v32 }
  0x88   : > { %2231 = vmatprep.subr.bf16.mxu1 %v2386_v1 }
  0x8a   : > { %2186 = vmatmul.mubr.msk.bf16.gmra.mxu1 %vm305_vm3, %v1004_v35  ;;  %v1362_v35 = vsel %vm1309_vm8, %v1352_v27, %v1361_v34 }
  0x8b   : > { %2189 = vmatprep.mubr.msk.bf16.mxu1 %vm2387_vm1, %v2386_v1  ;;  %2232 = vmatpush3.bf16.msra.mxu1 %v2357_v28 }
  0x8c   : > { %2216 = vmatmul.mubr.msk.bf16.gmra.mxu0 %vm305_vm3, %v1178_v36 }
  0x8d   : > { %2219 = vmatprep.mubr.msk.bf16.mxu0 %vm2387_vm1, %v2386_v1 }
  0x92   : > { %2190 = vmatmul.mubr.msk.bf16.gmra.mxu1 %vm305_vm3, %v1006_v40 }
  0x93   : > { %2193 = vmatprep.mubr.msk.bf16.mxu1 %vm2387_vm1, %v2386_v1 }
  0x94   : > { %2220 = vmatmul.mubr.msk.bf16.gmra.mxu0 %vm305_vm3, %v1180_v15 }
  0x95   : > { %2223 = vmatprep.mubr.msk.bf16.mxu0 %vm2387_vm1, %v2386_v1 }
  0x9a   : > { %2194 = vmatmul.mubr.msk.bf16.gmra.mxu1 %vm305_vm3, %v1008_v44 }
  0x9b   : > { %2197 = vmatprep.mubr.msk.bf16.mxu1 %vm2387_vm1, %v2386_v1 }
  0x9c   : > { %2224 = vmatmul.mubr.msk.bf16.gmra.mxu0 %vm305_vm3, %v1182_v45 }
  0x9d   : > { %2259 = vmatprep.mubr.msk.bf16.mxu0 %vm2387_vm1, %v2386_v1 }
  0xa2   : > { %2198 = vmatmul.mubr.msk.bf16.gmra.mxu1 %vm305_vm3, %v1010_v55 }
  0xa3   : > { %2233 = vmatprep.mubr.msk.bf16.mxu1 %vm2387_vm1, %v2386_v1 }
  0xa4   : > { %2260 = vmatmul.mubr.msk.bf16.vlgmr.msra.gmra.mxu0 %vm305_vm3, %v1492_v62 }
  0xa5   : > { %2263 = vmatprep.mubr.msk.bf16.mxu0 %vm2387_vm1, %v2386_v1 }
  0xaa   : > { %2234 = vmatmul.mubr.msk.bf16.vlgmr.msra.gmra.mxu1 %vm305_vm3, %v1326_v8 }
  0xab   : > { %2237 = vmatprep.mubr.msk.bf16.mxu1 %vm2387_vm1, %v2386_v1 }
  0xac   : > { %2264 = vmatmul.mubr.msk.bf16.gmra.mxu0 %vm305_vm3, %v1494_v11 }
  0xad   : > { %2267 = vmatprep.mubr.msk.bf16.mxu0 %vm2387_vm1, %v2386_v1 }
  0xb2   : > { %2238 = vmatmul.mubr.msk.bf16.gmra.mxu1 %vm305_vm3, %v1335_v14 }
  0xb3   : > { %2241 = vmatprep.mubr.msk.bf16.mxu1 %vm2387_vm1, %v2386_v1 }
  0xb4   : > { %2268 = vmatmul.mubr.msk.bf16.gmra.mxu0 %vm305_vm3, %v1496_v21 }
  0xb5   : > { %2271 = vmatprep.mubr.msk.bf16.mxu0 %vm2387_vm1, %v2386_v1 }
  0xba   : > { %2242 = vmatmul.mubr.msk.bf16.gmra.mxu1 %vm305_vm3, %v1344_v25 }
  0xbb   : > { %2245 = vmatprep.mubr.msk.bf16.mxu1 %vm2387_vm1, %v2386_v1 }
  0xbc   : > { %2272 = vmatmul.mubr.msk.bf16.gmra.mxu0 %vm305_vm3, %v1498_v7 }
  0xbd   : > { %2275 = vmatprep.mubr.msk.bf16.mxu0 %vm2387_vm1, %v2386_v1 }
  0xc2   : > { %2246 = vmatmul.mubr.msk.bf16.gmra.mxu1 %vm305_vm3, %v1353_v31 }
  0xc3   : > { %2249 = vmatprep.mubr.msk.bf16.mxu1 %vm2387_vm1, %v2386_v1  ;;  %vm1681_vm1 = vcmask 1044484  }
  0xc4   : > { %2276 = vmatmul.mubr.msk.bf16.gmra.mxu0 %vm305_vm3, %v1500_v6  ;;  %vm2959_vm2 = vmor %vm1680_vm0, %vm1681_vm1 }
  0xca   : > { %2250 = vmatmul.mubr.msk.bf16.gmra.mxu1 %vm305_vm3, %v1362_v35 }
  0xda   : > { %v375_v28 = vpop.f32.mrf.mxu1 }
  0xdc   : > { %v2061_v36 = vpop.f32.mrf.mxu1  ;;  %v359_v37 = vpop.f32.mrf.mxu0 }
  0xde   : > { %v378_v38 = vpop.f32.mrf.mxu1  ;;  %v2053_v39 = vpop.f32.mrf.mxu0 }
  0xe0   : > { %v2062_v40 = vpop.f32.mrf.mxu1  ;;  %v362_v15 = vpop.f32.mrf.mxu0 }
  0xe2   : > { %v383_v41 = vpop.f32.mrf.mxu1  ;;  %v2054_v53 = vpop.f32.mrf.mxu0 }
  0xe4   : > { %v2065_v42 = vpop.f32.mrf.mxu1  ;;  %v367_v43 = vpop.f32.mrf.mxu0 }
  0xe6   : > { %v386_v44 = vpop.f32.mrf.mxu1  ;;  %v2057_v1 = vpop.f32.mrf.mxu0 }
  0xe8   : > { %v2066_v45 = vpop.f32.mrf.mxu1  ;;  %v370_v46 = vpop.f32.mrf.mxu0 }
  0xea   : > { %v391_v47 = vpop.f32.mrf.mxu1  ;;  %v2058_v54 = vpop.f32.mrf.mxu0 }
  0xec   : > { %v2069_v48 = vpop.f32.mrf.mxu1  ;;  %v588_v49 = vpop.f32.mrf.mxu0 }
  0xee   : > { %v394_v50 = vpop.f32.mrf.mxu1  ;;  %v2105_v51 = vpop.f32.mrf.mxu0 }
  0xf0   : > { %v2070_v52 = vpop.f32.mrf.mxu1  ;;  %v591_v55 = vpop.f32.mrf.mxu0 }
  0xf2   : > { %v460_v56 = vpop.f32.mrf.mxu1  ;;  %v2106_v58 = vpop.f32.mrf.mxu0 }
  0xf3   : > { %v461_v59 = vadd.f32 %v460_v56, %v359_v37 }
  0xf4   : > { %v2079_v61 = vpop.f32.mrf.mxu1  ;;  %v596_v62 = vpop.f32.mrf.mxu0 }
  0xf5   : > { %v627_v63 = vadd.f32 %v588_v49, %v461_v59 }
  0xf6   : > { %v463_v0 = vpop.f32.mrf.mxu1  ;;  %v2109_v2 = vpop.f32.mrf.mxu0 }
  0xf7   : > { %v464_v3 = vadd.f32 %v463_v0, %v362_v15 }
  0xf8   : > { %v2080_v4 = vpop.f32.mrf.mxu1  ;;  %v599_v8 = vpop.f32.mrf.mxu0 }
  0xf9   : > { %v628_v9 = vadd.f32 %v591_v55, %v464_v3 }
  0xfa   : > { %v468_v10 = vpop.f32.mrf.mxu1  ;;  %v2110_v11 = vpop.f32.mrf.mxu0 }
  0xfb   : > { %v469_v12 = vadd.f32 %v468_v10, %v367_v43 }
  0xfc   : > { %v2083_v13 = vpop.f32.mrf.mxu1  ;;  %v604_v57 = vpop.f32.mrf.mxu0 }
  0xfd   : > { %v629_v17 = vadd.f32 %v596_v62, %v469_v12 }
  0xfe   : > { %v471_v14 = vpop.f32.mrf.mxu1  ;;  %v2113_v19 = vpop.f32.mrf.mxu0 }
  0xff   : > { %v472_v20 = vadd.f32 %v471_v14, %v370_v46 }
 0x100   : > { %v2084_v21 = vpop.f32.mrf.mxu1  ;;  %v607_v22 = vpop.f32.mrf.mxu0 }
 0x101   : > { %v630_v60 = vadd.f32 %v599_v8, %v472_v20 }
 0x102   : > { %v476_v23 = vpop.f32.mrf.mxu1  ;;  %v2114_v24 = vpop.f32.mrf.mxu0 }
 0x103   : > { %v477_v25 = vadd.f32 %v476_v23, %v375_v28 }
 0x104   : > { %v2087_v5 = vpop.f32.mrf.mxu1  ;;  %v612_v26 = vpop.f32.mrf.mxu0 }
 0x105   : > { %v631_v16 = vadd.f32 %v604_v57, %v477_v25 }
 0x106   : > { %v479_v7 = vpop.f32.mrf.mxu1  ;;  %v2117_v27 = vpop.f32.mrf.mxu0 }
 0x107   : > { %v480_v18 = vadd.f32 %v479_v7, %v378_v38 }
 0x108   : > { %v2088_v29 = vpop.f32.mrf.mxu1  ;;  %v615_v30 = vpop.f32.mrf.mxu0 }
 0x109   : > { %v632_v31 = vadd.f32 %v607_v22, %v480_v18 }
 0x10a   : > { %v484_v32 = vpop.f32.mrf.mxu1  ;;  %v2118_v33 = vpop.f32.mrf.mxu0 }
 0x10b   : > { %v485_v6 = vadd.f32 %v484_v32, %v383_v41 }
 0x10c   : > { %v2091_v34 = vpop.f32.mrf.mxu1  ;;  %v620_v35 = vpop.f32.mrf.mxu0 }
 0x10d   : > { %v633_v36 = vadd.f32 %v612_v26, %v485_v6 }
 0x10e   : > { %v487_v37 = vpop.f32.mrf.mxu1  ;;  %v2121_v39 = vpop.f32.mrf.mxu0 }
 0x10f   : > { %v488_v40 = vadd.f32 %v487_v37, %v386_v44 }
 0x110   : > { %v2092_v15 = vpop.f32.mrf.mxu1  ;;  %v623_v28 = vpop.f32.mrf.mxu0 }
 0x111   : > { %v634_v53 = vadd.f32 %v615_v30, %v488_v40 }
 0x112   : > { %v492_v42 = vpop.f32.mrf.mxu1  ;;  %v2122_v43 = vpop.f32.mrf.mxu0 }
 0x113   : > { %v493_v1 = vadd.f32 %v492_v42, %v391_v47 }
 0x114   : > { %v2095_v45 = vpop.f32.mrf.mxu1  ;;  %v940_v38 = vpop.f32.mrf.mxu0 }
 0x115   : > { %v635_v46 = vadd.f32 %v620_v35, %v493_v1 }
 0x116   : > { %v495_v54 = vpop.f32.mrf.mxu1  ;;  %v2157_v48 = vpop.f32.mrf.mxu0 }
 0x117   : > { %v496_v49 = vadd.f32 %v495_v54, %v394_v50 }
 0x118   : > { %v2096_v51 = vpop.f32.mrf.mxu1  ;;  %v943_v41 = vpop.f32.mrf.mxu0 }
 0x119   : > { %v636_v52 = vadd.f32 %v623_v28, %v496_v49 }
 0x11a   : > { %v760_v55 = vpop.f32.mrf.mxu1  ;;  %v2158_v56 = vpop.f32.mrf.mxu0 }
 0x11b   : > { %v799_v58 = vadd.f32 %v760_v55, %v627_v63 }
 0x11c   : > { %v2131_v59 = vpop.f32.mrf.mxu1  ;;  %v948_v44 = vpop.f32.mrf.mxu0 }
 0x11d   : > { %v2864_v61 = vadd.f32 %v940_v38, %v799_v58 }
 0x11e   : > { %v763_v62 = vpop.f32.mrf.mxu1  ;;  %v2161_v0 = vpop.f32.mrf.mxu0 }
 0x11f   : > { %v800_v2 = vadd.f32 %v763_v62, %v628_v9 }
 0x120   : > { %v2132_v47 = vpop.f32.mrf.mxu1  ;;  %v951_v3 = vpop.f32.mrf.mxu0 }
 0x121   : > { %v2866_v4 = vadd.f32 %v943_v41, %v800_v2 }
 0x122   : > { %v768_v8 = vpop.f32.mrf.mxu1  ;;  %v2162_v10 = vpop.f32.mrf.mxu0 }
 0x123   : > { %v801_v50 = vadd.f32 %v768_v8, %v629_v17 }
 0x124   : > { %v2135_v11 = vpop.f32.mrf.mxu1  ;;  %v956_v12 = vpop.f32.mrf.mxu0 }
 0x125   : > { %v2868_v13 = vadd.f32 %v948_v44, %v801_v50 }
 0x126   : > { %v771_v57 = vpop.f32.mrf.mxu1  ;;  %v2165_v63 = vpop.f32.mrf.mxu0 }
 0x127   : > { %v802_v14 = vadd.f32 %v771_v57, %v630_v60 }
 0x128   : > { %v2136_v19 = vpop.f32.mrf.mxu1  ;;  %v959_v20 = vpop.f32.mrf.mxu0 }
 0x129   : > { %v2870_v21 = vadd.f32 %v951_v3, %v802_v14 }
 0x12a   : > { %v776_v22 = vpop.f32.mrf.mxu1  ;;  %v2166_v9 = vpop.f32.mrf.mxu0 }
 0x12b   : > { %v803_v23 = vadd.f32 %v776_v22, %v631_v16 }
 0x12c   : > { %v2139_v24 = vpop.f32.mrf.mxu1  ;;  %v964_v25 = vpop.f32.mrf.mxu0 }
 0x12d   : > { %v2872_v5 = vadd.f32 %v956_v12, %v803_v23 }
 0x12e   : > { %v779_v26 = vpop.f32.mrf.mxu1  ;;  %v2169_v17 = vpop.f32.mrf.mxu0 }
 0x12f   : > { %v804_v7 = vadd.f32 %v779_v26, %v632_v31 }
 0x130   : > { %v2140_v27 = vpop.f32.mrf.mxu1  ;;  %v967_v18 = vpop.f32.mrf.mxu0 }
 0x131   : > { %v2874_v29 = vadd.f32 %v959_v20, %v804_v7 }
 0x132   : > { %v784_v30 = vpop.f32.mrf.mxu1  ;;  %v2170_v60 = vpop.f32.mrf.mxu0 }
 0x133   : > { %v805_v32 = vadd.f32 %v784_v30, %v633_v36 }
 0x134   : > { %v2143_v33 = vpop.f32.mrf.mxu1  ;;  %v972_v6 = vpop.f32.mrf.mxu0 }
 0x135   : > { %v2876_v34 = vadd.f32 %v964_v25, %v805_v32 }
 0x136   : > { %v787_v35 = vpop.f32.mrf.mxu1  ;;  %v2173_v16 = vpop.f32.mrf.mxu0 }
 0x137   : > { %v806_v37 = vadd.f32 %v787_v35, %v634_v53 }
 0x138   : > { %v2144_v39 = vpop.f32.mrf.mxu1  ;;  %v975_v40 = vpop.f32.mrf.mxu0 }
 0x139   : > { %v2878_v15 = vadd.f32 %v967_v18, %v806_v37 }
 0x13a   : > { %v792_v28 = vpop.f32.mrf.mxu1  ;;  %v2174_v31 = vpop.f32.mrf.mxu0 }
 0x13b   : > { %v807_v42 = vadd.f32 %v792_v28, %v635_v46 }
 0x13c   : > { %v2147_v43 = vpop.f32.mrf.mxu1  ;;  %v1250_v1 = vpop.f32.mrf.mxu0 }
 0x13d   : > { %v2880_v45 = vadd.f32 %v972_v6, %v807_v42 }
 0x13e   : > { %v795_v38 = vpop.f32.mrf.mxu1  ;;  %v2209_v36 = vpop.f32.mrf.mxu0 }
 0x13f   : > { %v808_v54 = vadd.f32 %v795_v38, %v636_v52 }
 0x140   : > { %v2148_v48 = vpop.f32.mrf.mxu1  ;;  %v1253_v49 = vpop.f32.mrf.mxu0 }
 0x141   : > { %v2882_v51 = vadd.f32 %v975_v40, %v808_v54 }
 0x142   : > { %v1078_v41 = vpop.f32.mrf.mxu1  ;;  %v2210_v53 = vpop.f32.mrf.mxu0 }
 0x143   : > { %v1117_v32 = vadd.f32 %v1078_v41, %v2864_v61  ;;  %v2910_v61 = vld [vmem:[%s3001_s2] ss:$0 sm:$0xff] }
 0x144   : > { %v2183_v55 = vpop.f32.mrf.mxu1  ;;  %v1258_v56 = vpop.f32.mrf.mxu0 }
 0x145   : > { %v1289_v39 = vadd.f32 %v1250_v1, %v1117_v32 }
 0x146   : > { %v1081_v58 = vpop.f32.mrf.mxu1  ;;  %v2213_v59 = vpop.f32.mrf.mxu0 }
 0x147   : > { %v1118_v37 = vadd.f32 %v1081_v58, %v2866_v4 }
 0x148   : > { %v2184_v44 = vpop.f32.mrf.mxu1  ;;  %v1261_v62 = vpop.f32.mrf.mxu0 }
 0x149   : > { %v1290_v54 = vadd.f32 %v1253_v49, %v1118_v37 }
 0x14a   : > { %v1086_v46 = vpop.f32.mrf.mxu1  ;;  %v2214_v0 = vpop.f32.mrf.mxu0 }
 0x14b   : > { %v1119_v38 = vadd.f32 %v1086_v46, %v2868_v13 }
 0x14c   : > { %v2187_v2 = vpop.f32.mrf.mxu1  ;;  %v2884_v47 = vpop.f32.mrf.mxu0 }
 0x14d   : > { %v1291_v44 = vadd.f32 %v1258_v56, %v1119_v38 }
 0x14e   : > { %v1089_v3 = vpop.f32.mrf.mxu1  ;;  %v2217_v8 = vpop.f32.mrf.mxu0 }
 0x14f   : > { %v1120_v4 = vadd.f32 %v1089_v3, %v2870_v21 }
 0x150   : > { %v2188_v52 = vpop.f32.mrf.mxu1  ;;  %v2886_v10 = vpop.f32.mrf.mxu0 }
 0x151   : > { %v1292_v8 = vadd.f32 %v1261_v62, %v1120_v4 }
 0x152   : > { %v1094_v50 = vpop.f32.mrf.mxu1  ;;  %v2218_v11 = vpop.f32.mrf.mxu0 }
 0x153   : > { %v1121_v11 = vadd.f32 %v1094_v50, %v2872_v5 }
 0x154   : > { %v2191_v12 = vpop.f32.mrf.mxu1  ;;  %v2888_v57 = vpop.f32.mrf.mxu0 }
 0x156   : > { %v1097_v63 = vpop.f32.mrf.mxu1  ;;  %v2221_v14 = vpop.f32.mrf.mxu0 }
 0x157   : > { %v1122_v62 = vadd.f32 %v1097_v63, %v2874_v29 }
 0x158   : > { %v2192_v19 = vpop.f32.mrf.mxu1  ;;  %v2890_v20 = vpop.f32.mrf.mxu0 }
 0x15a   : > { %v2892_v22 = vpop.f32.mrf.mxu1  ;;  %v2222_v9 = vpop.f32.mrf.mxu0 }
 0x15b   : > { %v1123_v29 = vadd.f32 %v2892_v22, %v2876_v34 }
 0x15c   : > { %v2195_v23 = vpop.f32.mrf.mxu1  ;;  %v2894_v24 = vpop.f32.mrf.mxu0 }
 0x15e   : > { %v2896_v25 = vpop.f32.mrf.mxu1  ;;  %v2225_v26 = vpop.f32.mrf.mxu0 }
 0x160   : > { %v2196_v17 = vpop.f32.mrf.mxu1  ;;  %v2898_v7 = vpop.f32.mrf.mxu0 }
 0x162   : > { %v2900_v27 = vpop.f32.mrf.mxu1  ;;  %v2226_v18 = vpop.f32.mrf.mxu0 }
 0x164   : > { %v2199_v30 = vpop.f32.mrf.mxu1  ;;  %v1568_v60 = vpop.f32.mrf.mxu0 }
 0x165   : > { %v1293_v30 = vadd.f32 %v2884_v47, %v1121_v11  ;;  %v1294_v47 = vadd.f32 %v2886_v10, %v1122_v62 }
 0x166   : > { %v2903_v33 = vpop.f32.mrf.mxu1  ;;  %v2261_v6 = vpop.f32.mrf.mxu0 }
 0x168   : > { %v2200_v35 = vpop.f32.mrf.mxu1  ;;  %v1571_v16 = vpop.f32.mrf.mxu0 }
 0x16a   : > { %v1430_v40 = vpop.f32.mrf.mxu1  ;;  %v2262_v28 = vpop.f32.mrf.mxu0 }
 0x16b   : > { %v1469_v31 = vadd.f32 %v1430_v40, %v1289_v39 }
 0x16c   : > { %v2235_v42 = vpop.f32.mrf.mxu1  ;;  %v1576_v43 = vpop.f32.mrf.mxu0 }
 0x16d   : > { %v1607_v36 = vadd.f32 %v1568_v60, %v1469_v31 }
 0x16e   : > { %v1433_v48 = vpop.f32.mrf.mxu1  ;;  %v2265_v41 = vpop.f32.mrf.mxu0 }
 0x16f   : > { %v1470_v53 = vadd.f32 %v1433_v48, %v1290_v54  ;;  %v1624_v58 = vadd.f32 %v2910_v61, %v1607_v36  ;;  %v1124_v48 = vadd.f32 %v2896_v25, %v2878_v15 }
 0x170   : > { %v2236_v1 = vpop.f32.mrf.mxu1  ;;  %v1579_v55 = vpop.f32.mrf.mxu0 }
 0x171   : > { %v1608_v59 = vadd.f32 %v1571_v16, %v1470_v53  ;;  %v1634_v12 = vmax.f32 %v1624_v58, 0.0  ;;  %v1295_v53 = vadd.f32 %v2888_v57, %v1123_v29 }
 0x172   : > { %v1438_v0 = vpop.f32.mrf.mxu1  ;;  %v2266_v13 = vpop.f32.mrf.mxu0 }
 0x173   : > { %v1625_v49 = vadd.f32 %v2910_v61, %v1608_v59  ;;  %v1471_v46 = vadd.f32 %v1438_v0, %v1291_v44 }
 0x174   : > { %v2239_v2 = vpop.f32.mrf.mxu1  ;;  %v1584_v52 = vpop.f32.mrf.mxu0 }
 0x175   : > { %v1635_v14 = vmax.f32 %v1625_v49, 0.0  ;;  %v1609_v21 = vadd.f32 %v1576_v43, %v1471_v46  ;;  %v1125_v46 = vadd.f32 %v2900_v27, %v2880_v45 }
 0x176   : > { %v1441_v56 = vpop.f32.mrf.mxu1  ;;  %v2269_v3 = vpop.f32.mrf.mxu0 }
 0x177   : > { %v1644_v19 = vpack.c.bf16 %v1635_v14, %v1634_v12  ;;  %v1626_v9 = vadd.f32 %v2910_v61, %v1609_v21  ;;  %v1472_v23 = vadd.f32 %v1441_v56, %v1292_v8  ;;  %v1964_v26 = vpack.c.bf16 %v1635_v14, %v1635_v14 }
 0x178   : > { %v2240_v5 = vpop.f32.mrf.mxu1  ;;  %v1587_v50 = vpop.f32.mrf.mxu0  ;;  %v1296_v8 = vadd.f32 %v2890_v20, %v1124_v48  ;;  %v1126_v20 = vadd.f32 %v2903_v33, %v2882_v51 }
 0x179   : > { %1650 = vst.msk [vmem:[%s2920_s7] sm:$0xf] %vm1649_vm9, %v1644_v19  ;;  %v1636_v17 = vmax.f32 %v1626_v9, 0.0  ;;  %v1610_v18 = vadd.f32 %v1579_v55, %v1472_v23  ;;  %v1948_v40 = vrot.slane %v1964_v26, 9  ;;  %v1297_v26 = vadd.f32 %v2894_v24, %v1125_v46 }
 0x17a   : > { %v1446_v60 = vpop.f32.mrf.mxu1  ;;  %v2270_v32 = vpop.f32.mrf.mxu0  ;;  %v1298_v29 = vadd.f32 %v2898_v7, %v1126_v20 }
 0x17b   : > { %v1965_v6 = vpack.c.bf16 %v1636_v17, %v1636_v17  ;;  %v1627_v35 = vadd.f32 %v2910_v61, %v1610_v18  ;;  %v1473_v16 = vadd.f32 %v1446_v60, %v1293_v30 }
 0x17c   : > { %v2243_v37 = vpop.f32.mrf.mxu1  ;;  %v1592_v39 = vpop.f32.mrf.mxu0 }
 0x17d   : > { %v1662_v28 = vrot.slane %v1965_v6, 5  ;;  %v1637_v31 = vmax.f32 %v1627_v35, 0.0  ;;  %v1611_v42 = vadd.f32 %v1584_v52, %v1473_v16  ;;  %v1950_v1 = vrot.slane %v1965_v6, 10 }
 0x17e   : > { %v1449_v43 = vpop.f32.mrf.mxu1  ;;  %v2273_v38 = vpop.f32.mrf.mxu0 }
 0x17f   : > { %v1663_v34 = vsel %vm2931_vm12, %v1948_v40, %v1662_v28  ;;  %v1966_v22 = vpack.c.bf16 %v1637_v31, %v1637_v31  ;;  %v1628_v36 = vadd.f32 %v2910_v61, %v1611_v42  ;;  %v1474_v54 = vadd.f32 %v1449_v43, %v1294_v47 }
 0x180   : > { %1665 = vst.msk [vmem:[%s2920_s7 + $0x4] sm:$0xf] %vm1649_vm9, %v1663_v34  ;;  %v2244_v41 = vpop.f32.mrf.mxu1  ;;  %v1595_v4 = vpop.f32.mrf.mxu0 }
 0x181   : > { %v1673_v55 = vrot.slane %v1966_v22, 6  ;;  %v1638_v58 = vmax.f32 %v1628_v36, 0.0  ;;  %v1612_v59 = vadd.f32 %v1587_v50, %v1474_v54  ;;  %v1952_v11 = vrot.slane %v1966_v22, 11 }
 0x182   : > { %v1454_v15 = vpop.f32.mrf.mxu1  ;;  %v2274_v25 = vpop.f32.mrf.mxu0 }
 0x183   : > { %v1674_v44 = vsel %vm2945_vm15, %v1950_v1, %v1673_v55  ;;  %v1967_v0 = vpack.c.bf16 %v1638_v58, %v1638_v58  ;;  %v1629_v13 = vadd.f32 %v2910_v61, %v1612_v59  ;;  %v1475_v49 = vadd.f32 %v1454_v15, %v1295_v53 }
 0x184   : > { %1676 = vst.msk [vmem:[%s2920_s7 + $0x8] sm:$0xf] %vm1649_vm9, %v1674_v44  ;;  %v2247_v2 = vpop.f32.mrf.mxu1  ;;  %v1600_v52 = vpop.f32.mrf.mxu0 }
 0x185   : > { %v1685_v12 = vrot.slane %v1967_v0, 7  ;;  %v1639_v14 = vmax.f32 %v1629_v13, 0.0  ;;  %v1613_v21 = vadd.f32 %v1592_v39, %v1475_v49 }
 0x186   : > { %v1457_v56 = vpop.f32.mrf.mxu1  ;;  %v2277_v45 = vpop.f32.mrf.mxu0 }
 0x187   : > { %v1686_v27 = vsel %vm2959_vm2, %v1952_v11, %v1685_v12  ;;  %v1968_v3 = vpack.c.bf16 %v1639_v14, %v1639_v14  ;;  %v1630_v19 = vadd.f32 %v2910_v61, %v1613_v21  ;;  %v1476_v9 = vadd.f32 %v1457_v56, %v1296_v8 }
 0x188   : > { %1688 = vst.msk [vmem:[%s2920_s7 + $0xc] sm:$0xf] %vm1649_vm9, %v1686_v27  ;;  %v2248_v23 = vpop.f32.mrf.mxu1  ;;  %v1603_v62 = vpop.f32.mrf.mxu0 }
 0x189   : > { %1692 = vst.msk [vmem:[%s2920_s7 + $0x10] sm:$0xf] %vm1649_vm9, %v1968_v3  ;;  %v1640_v5 = vmax.f32 %v1630_v19, 0.0  ;;  %v1614_v50 = vadd.f32 %v1595_v4, %v1476_v9 }
 0x18a   : > { %v1462_v17 = vpop.f32.mrf.mxu1  ;;  %v2278_v18 = vpop.f32.mrf.mxu0 }
 0x18b   : > { %v1631_v30 = vadd.f32 %v2910_v61, %v1614_v50  ;;  %v1477_v60 = vadd.f32 %v1462_v17, %v1297_v26  ;;  %v1969_v6 = vpack.c.bf16 %v1640_v5, %v1640_v5 }
 0x18c   : > { %v2251_v32 = vpop.f32.mrf.mxu1 }
 0x18d   : > { %v1641_v35 = vmax.f32 %v1631_v30, 0.0  ;;  %v1615_v16 = vadd.f32 %v1600_v52, %v1477_v60  ;;  %v1956_v24 = vrot.slane %v1969_v6, 9 }
 0x18e   : > { %v1465_v37 = vpop.f32.mrf.mxu1 }
 0x18f   : > { %v1970_v51 = vpack.c.bf16 %v1641_v35, %v1641_v35  ;;  %v1632_v33 = vadd.f32 %v2910_v61, %v1615_v16  ;;  %v1478_v47 = vadd.f32 %v1465_v37, %v1298_v29 }
 0x190   : > { %v2252_v39 = vpop.f32.mrf.mxu1 }
 0x191   : > { %v1700_v40 = vrot.slane %v1970_v51, 5  ;;  %v1642_v28 = vmax.f32 %v1632_v33, 0.0  ;;  %v1616_v31 = vadd.f32 %v1603_v62, %v1478_v47  ;;  %v1958_v7 = vrot.slane %v1970_v51, 10 }
 0x193   : > { %v1701_v42 = vsel %vm2931_vm12, %v1956_v24, %v1700_v40  ;;  %v1971_v43 = vpack.c.bf16 %v1642_v28, %v1642_v28  ;;  %v1633_v38 = vadd.f32 %v2910_v61, %v1616_v31 }
 0x194   : > { %1703 = vst.msk [vmem:[%s2920_s7 + $0x14] sm:$0xf] %vm1649_vm9, %v1701_v42 }
 0x195   : > { %v1709_v34 = vrot.slane %v1971_v43, 6  ;;  %v1643_v22 = vmax.f32 %v1633_v38, 0.0  ;;  %v1960_v48 = vrot.slane %v1971_v43, 11 }
 0x197   : > { %v1710_v36 = vsel %vm2945_vm15, %v1958_v7, %v1709_v34  ;;  %v1972_v54 = vpack.c.bf16 %v1643_v22, %v1643_v22 }
 0x198   : > { %1712 = vst.msk [vmem:[%s2920_s7 + $0x18] sm:$0xf] %vm1649_vm9, %v1710_v36 }
 0x199   : > { %v1717_v41 = vrot.slane %v1972_v54, 7 }
 0x19b   : > { %v1718_v63 = vsel %vm2959_vm2, %v1960_v48, %v1717_v41 }
 0x19c   : > { %1720 = vst.msk [vmem:[%s2920_s7 + $0x1c] sm:$0xf] %vm1649_vm9, %v1718_v63 }
 0x19d PF: > { %s13_s14 = sadd.s32 1, %s2384_s14   ;;  %s3009_s12 = smov %s2380_s13 }
 0x19e   : > { %p10_p5 = scmp.ge.s32.totalorder %s13_s14, 4   ;;  %s3010_s13 = smov %s3012_s15 }
 0x1a0   :  { %12 = sbr.rel (!%p10_p5) target bundleno = 2 (0x2), region = 70 }

// kernel: conv_block_forward.3
= control target key start
LH: loop header
LB: loop body
LE: loop exit
PB: predicated region body
PF: predicated region fallthrough
CT: control target
= control target key end

     0   :  { %s2694_s12 = smov 0   ;;  %s2696_s13 = smov 0   ;;  %s3354_s0 = inlined_call_operand.vmem [shape: bf16[2,110,80], index: 0, kind: input, shape index: {}]   ;;  %s3355_s1 = inlined_call_operand.vmem [shape: bf16[9,80,64], index: 1, kind: input, shape index: {}]   ;;  %s3356_s2 = inlined_call_operand.vmem [shape: f32[1,64], index: 2, kind: input, shape index: {}]   ;;  %s3357_s3 = inlined_call_operand.vmem [shape: bf16[2,64,64], index: 3, kind: output, shape index: {}]  }
   0x1   :  { %s2698_s14 = smov 0  }
   0x2 LB: > { %s25_s15 = sadd.s32 1, %s2666_s13  ;;  %p1958_p0 = scmp.ge.s32.totalorder %s2670_s14, 1  ;;  %s2670_s14 = sphi %s2698_s14, %s13_s14   ;;  %s2666_s13 = sphi %s2696_s13, %s3365_s13   ;;  %s2662_s12 = sphi %s2694_s12, %s3364_s12  }
   0x3   : > { %p27_p1 = scmp.ge.s32.totalorder %s25_s15, 2  ;;  %p151_p2 = scmp.lt.s32.totalorder %s2670_s14, 3 }
   0x5   : > { %s3367_s15 = smov (%p27_p1, %s25_s15), 0  ;;  %p152_p3 = pnand %p1958_p0, %p151_p2 }
   0x6   : > { %p179_p4 = scmp.lt.s32.totalorder (!%p152_p3), %s2662_s12, 1 }
   0x7   : > { %155 = sbr.rel (%p152_p3) target bundleno = 418 (0x1a2), region = 32 }
   0xc   : > { %v2580_v0 = vld [vmem:[%s3355_s1 + $0x48] sm:$0xff]   ;;  %v2672_v1 = vmov 0.0   ;;  %v2581_v2 = vld [vmem:[%s3355_s1 + $0x40] sm:$0xff]   ;;  %vm2673_vm0 = vmmov 0   ;;  %s3369_s12 = smov (!%p179_p4, %s2662_s12), 1  ;;  %v2582_v3 = vld [vmem:[%s3355_s1 + $0x38] sm:$0xff]  }
   0xd   : > { %2273 = vmatprep.subr.bf16.mxu0 %v2672_v1  ;;  %2543 = vmatprep.subr.bf16.mxu1 %v2672_v1  ;;  %s2553_s22 = smul.u32 56, %s3369_s12  ;;  %v2583_v4 = vld [vmem:[%s3355_s1 + $0x30] sm:$0xff]   ;;  %v2584_v9 = vld [vmem:[%s3355_s1 + $0x28] sm:$0xff]   ;;  %vm330_vm1 = vcmask 654336   ;;  %vm255_vm2 = vsmask.f32 7424 }
   0xe   : > { %2274 = vmatpush3.bf16.msra.mxu0 %v2580_v0  ;;  %2548 = vmatpush3.bf16.msra.mxu1 %v2580_v0  ;;  %v2589_v24 = vld [vmem:[%s3355_s1 + $0x20] sm:$0xff]   ;;  %v2590_v25 = vld [vmem:[%s3355_s1 + $0x70] sm:$0xff]   ;;  %v2591_v34 = vld [vmem:[%s3355_s1 + $0x18] sm:$0xff]   ;;  %vm547_vm3 = vcmask 1046528   ;;  %vm891_vm4 = vsmask.f32 6400 }
   0xf   : > { %2275 = vmatprep.subr.bf16.mxu0 %v2672_v1  ;;  %2544 = vmatprep.subr.bf16.mxu1 %v2672_v1  ;;  %s2740_s27 = scalar_lea.vmem %s3354_s0, %s2553_s22  ;;  %v2592_v35 = vld [vmem:[%s3355_s1 + $0x68] sm:$0xff]   ;;  %v2595_v40 = vld [vmem:[%s3355_s1 + $0x10] sm:$0xff]   ;;  %v2596_v43 = vld [vmem:[%s3355_s1 + $0x60] sm:$0xff]   ;;  %vm1088_vm5 = vcmask 1045504   ;;  %vm1432_vm6 = vsmask.f32 5376 }
  0x10   : > { %2283 = vmatprep.mubr.msk.bf16.mxu0 %vm2673_vm0, %v2672_v1  ;;  %2295 = vmatprep.mubr.msk.bf16.mxu1 %vm2673_vm0, %v2672_v1  ;;  %v195_v5 = vld [vmem:[%s2740_s27] sm:$0xf]  ;;  %v2744_v6 = vld [vmem:[%s2740_s27 + $0x4] sm:$0xf]  ;;  %v2750_v8 = vld [vmem:[%s2740_s27 + $0x8] sm:$0xff]   ;;  %vm1629_vm7 = vcmask 1044480  }
  0x11   : > { %v2747_v7 = vcombine.low %v195_v5, %v2744_v6  ;;  %v264_v12 = vshll.u32 %v2750_v8, 16  ;;  %v2761_v13 = vld [vmem:[%s2740_s27 + $0x18] sm:$0xff]   ;;  %v2764_v14 = vld [vmem:[%s2740_s27 + $0x20] sm:$0xff]   ;;  %v2767_v15 = vld [vmem:[%s2740_s27 + $0x10] sm:$0xff]   ;;  %v268_v26 = vshrl.u32 %v2750_v8, 16  ;;  %v549_v55 = vrot.slane %v2750_v8, 1 }
  0x12   : > { %2276 = vmatpush3.bf16.msra.mxu0 %v2581_v2  ;;  %2549 = vmatpush3.bf16.msra.mxu1 %v2581_v2  ;;  %v280_v18 = vshll.u32 %v2761_v13, 16  ;;  %v284_v19 = vshrl.u32 %v2761_v13, 16  ;;  %v288_v20 = vshll.u32 %v2764_v14, 16  ;;  %v2775_v21 = vld [vmem:[%s2740_s27 + $0x28] ss:$0 sps:$4 sm:$0x11]  }
  0x13   : > { %2277 = vmatprep.subr.bf16.mxu0 %v2672_v1  ;;  %2545 = vmatprep.subr.bf16.mxu1 %v2672_v1  ;;  %v257_v10 = vshrl.u32 %v2747_v7, 16  ;;  %v259_v11 = vshll.u32 %v2747_v7, 16  ;;  %v266_v17 = vrot.slane %v264_v12, 1  ;;  %v272_v28 = vshll.u32 %v2767_v15, 16  ;;  %v2597_v45 = vld [vmem:[%s3355_s1 + $0x8] sm:$0xff]   ;;  %v2598_v47 = vld [vmem:[%s3355_s1 + $0x58] sm:$0xff]  }
  0x14   : > { %v282_v23 = vrot.slane %v280_v18, 1  ;;  %v290_v27 = vrot.slane %v288_v20, 1  ;;  %v292_v29 = vshrl.u32 %v2764_v14, 16  ;;  %v296_v30 = vshll.u32 %v2775_v21, 16  ;;  %v532_v48 = vld [vmem:[%s2740_s27] sm:$0xe] }
  0x15   : > { %v261_v16 = vrot.slane %v259_v11, 1  ;;  %v270_v36 = vor.u32 %v268_v26, %v266_v17  ;;  %v274_v37 = vrot.slane %v272_v28, 1  ;;  %v276_v44 = vshrl.u32 %v2767_v15, 16  ;;  %v2599_v49 = vld [vmem:[%s3355_s1] sm:$0xff]   ;;  %v2600_v51 = vld [vmem:[%s3355_s1 + $0x50] sm:$0xff]   ;;  %v2601_v53 = vld [vmem:[%s3355_s1 + $0x98] sm:$0xff]  }
  0x16   : > { %2278 = vmatpush3.bf16.msra.mxu0 %v2582_v3  ;;  %2550 = vmatpush3.bf16.msra.mxu1 %v2582_v3  ;;  %v286_v32 = vor.u32 %v284_v19, %v282_v23  ;;  %v294_v38 = vor.u32 %v292_v29, %v290_v27  ;;  %v298_v39 = vrot.slane %v296_v30, 1  ;;  %v2008_v52 = vcombine.low %v532_v48, %v2744_v6  ;;  %v2603_v57 = vld [vmem:[%s3355_s1 + $0xc0] sm:$0xff]   ;;  %v2604_v58 = vld [vmem:[%s3355_s1 + $0x90] sm:$0xff]   ;;  %v2605_v60 = vld [vmem:[%s3355_s1 + $0xb8] sm:$0xff]   ;;  %s2173_s22 = sshll.u32 %s3369_s12, 5 }
  0x17   : > { %2279 = vmatprep.subr.bf16.mxu0 %v2672_v1  ;;  %2546 = vmatprep.subr.bf16.mxu1 %v2672_v1  ;;  %v262_v22 = vor.u32 %v261_v16, %v257_v10  ;;  %v275_v41 = vsel %vm255_vm2, %v270_v36, %v274_v37  ;;  %v278_v46 = vor.u32 %v276_v44, %v274_v37  ;;  %v551_v59 = vrot.slane %v2767_v15, 1  ;;  %v2868_v61 = vld [vmem:[%s2740_s27 + $0x24] sm:$0xff]   ;;  %v2625_v63 = vld [vmem:[%s2740_s27 + $0x2c] ss:$0 sps:$4 sm:$0x11]   ;;  %v2607_v2 = vld [vmem:[%s3355_s1 + $0xb0] sm:$0xff]   ;;  %s3275_s25 = scalar_lea.vmem %s3357_s3, %s2173_s22 }
  0x18   : > { %v291_v33 = vsel %vm255_vm2, %v286_v32, %v290_v27  ;;  %v299_v42 = vsel %vm255_vm2, %v294_v38, %v298_v39  ;;  %v548_v54 = vrot.slane %v2008_v52, 1  ;;  %v2606_v62 = vld [vmem:[%s3355_s1 + $0x88] sm:$0xff]   ;;  %v744_v3 = vrot.slane %v2868_v61, 1  ;;  %v2608_v5 = vld [vmem:[%s3355_s1 + $0x80] sm:$0xff]   ;;  %v2615_v38 = vld [vmem:[%s3355_s1 + $0x110] sm:$0xff]  }
  0x19   : > { %v267_v31 = vsel %vm255_vm2, %v262_v22, %v266_v17  ;;  %v283_v50 = vsel %vm255_vm2, %v278_v46, %v282_v23  ;;  %v552_v0 = vsel %vm547_vm3, %v549_v55, %v551_v59  ;;  %v2611_v10 = vld [vmem:[%s3355_s1 + $0xa0] sm:$0xff]   ;;  %v555_v12 = vrot.slane %v2764_v14, 1  ;;  %v2925_v16 = vld [vmem:[%s2740_s27 + $0x8] sm:$0xf]  ;;  %v2935_v19 = vld [vmem:[%s2740_s27 + $0xc] sm:$0xff]  }
  0x1a   : > { %2280 = vmatpush3.bf16.msra.mxu0 %v2583_v4  ;;  %2551 = vmatpush3.bf16.msra.mxu1 %v2583_v4  ;;  %v550_v56 = vsel %vm547_vm3, %v548_v54, %v549_v55  ;;  %v746_v4 = vrot.slane %v2625_v63, 1  ;;  %v557_v20 = vrot.slane %v2775_v21, 1  ;;  %v738_v27 = vrot.slane %v2935_v19, 1  ;;  %v2618_v46 = vld [vmem:[%s3355_s1 + $0x108] sm:$0xff]   ;;  %v2621_v54 = vld [vmem:[%s3355_s1 + $0x100] sm:$0xff]   ;;  %v2623_v55 = vld [vmem:[%s3355_s1 + $0xd0] sm:$0xff]  }
  0x1b   : > { %2281 = vmatprep.subr.bf16.mxu0 %v2672_v1  ;;  %2547 = vmatprep.subr.bf16.mxu1 %v2672_v1  ;;  %vm1801_vm8 = vcmask 519168   ;;  %vm1809_vm9 = vcmask 1042432   ;;  %vm1810_vm10 = vcmask 1046532   ;;  %vm1820_vm12 = vcmask 1041408  }
  0x1c   : > { %v2895_v6 = vsel %vm547_vm3, %v744_v3, %v746_v4  ;;  %v3022_v4 = vld [vmem:[%s2740_s27 + $0x2c] ss:$0 sps:$4 sm:$0x33]   ;;  %vm3286_vm11 = vmor %vm1809_vm9, %vm1810_vm10  ;;  %vm1821_vm13 = vcmask 1045508   ;;  %vm1832_vm15 = vcmask 1040384  }
  0x1d   : > { %vm3299_vm14 = vmor %vm1820_vm12, %vm1821_vm13 }
  0x1e   : > { %2282 = vmatpush3.bf16.msra.mxu0 %v2584_v9  ;;  %2552 = vmatpush3.bf16.msra.mxu1 %v2584_v9  ;;  %v2610_v9 = vld [vmem:[%s3355_s1 + $0x78] sm:$0xff]  }
  0x1f   : > { %2303 = vmatprep.subr.bf16.mxu1 %v2672_v1  ;;  %2333 = vmatprep.subr.bf16.mxu0 %v2672_v1 }
  0x21   : > { %2284 = vmatmul.mubr.msk.bf16.vlgmr.msra.gmra.mxu0 %vm330_vm1, %v267_v31  ;;  %2296 = vmatmul.mubr.msk.bf16.vlgmr.msra.gmra.mxu1 %vm330_vm1, %v291_v33  ;;  %v2950_v31 = vld [vmem:[%s2740_s27 + $0x14] sm:$0xff]  }
  0x22   : > { %2304 = vmatpush3.bf16.msra.mxu1 %v2589_v24  ;;  %2334 = vmatpush3.bf16.msra.mxu0 %v2590_v25  ;;  %v904_v24 = vshll.u32 %v2935_v19, 16  ;;  %v558_v25 = vsel %vm547_vm3, %v555_v12, %v557_v20  ;;  %v913_v36 = vshll.u32 %v2950_v31, 16  ;;  %v740_v39 = vrot.slane %v2950_v31, 1  ;;  %v1228_v20 = vld [vmem:[%s2740_s27 + $0x8] sm:$0xc] }
  0x23   : > { %2305 = vmatprep.subr.bf16.mxu1 %v2672_v1  ;;  %2335 = vmatprep.subr.bf16.mxu0 %v2672_v1 }
  0x24   : > { %2287 = vmatprep.mubr.msk.bf16.mxu0 %vm2673_vm0, %v2672_v1  ;;  %2299 = vmatprep.mubr.msk.bf16.mxu1 %vm2673_vm0, %v2672_v1  ;;  %v906_v30 = vrot.slane %v904_v24, 2  ;;  %v741_v44 = vsel %vm547_vm3, %v738_v27, %v740_v39  ;;  %v1090_v24 = vrot.slane %v2935_v19, 2 }
  0x26   : > { %2306 = vmatpush3.bf16.msra.mxu1 %v2591_v34  ;;  %2336 = vmatpush3.bf16.msra.mxu0 %v2592_v35  ;;  %v910_v35 = vshrl.u32 %v2950_v31, 16 }
  0x27   : > { %2307 = vmatprep.subr.bf16.mxu1 %v2672_v1  ;;  %2337 = vmatprep.subr.bf16.mxu0 %v2672_v1 }
  0x29   : > { %2288 = vmatmul.mubr.msk.bf16.gmra.mxu0 %vm330_vm1, %v275_v41  ;;  %2300 = vmatmul.mubr.msk.bf16.gmra.mxu1 %vm330_vm1, %v299_v42  ;;  %v915_v41 = vrot.slane %v913_v36, 2  ;;  %v2970_v42 = vld [vmem:[%s2740_s27 + $0x1c] sm:$0xff]  }
  0x2a   : > { %2308 = vmatpush3.bf16.msra.mxu1 %v2595_v40  ;;  %2338 = vmatpush3.bf16.msra.mxu0 %v2596_v43  ;;  %v912_v40 = vrot.slane %v910_v35, 1  ;;  %v2617_v43 = vld [vmem:[%s3355_s1 + $0xe0] sm:$0xff]   ;;  %v922_v48 = vshll.u32 %v2970_v42, 16  ;;  %v1094_v36 = vrot.slane %v2970_v42, 2 }
  0x2b   : > { %2309 = vmatprep.subr.bf16.mxu1 %v2672_v1  ;;  %2291 = vmatprep.mubr.msk.bf16.mxu0 %vm2673_vm0, %v2672_v1 }
  0x2c   : > { %2339 = vmatprep.subr.bf16.mxu0 %v2672_v1  ;;  %2313 = vmatprep.mubr.msk.bf16.mxu1 %vm2673_vm0, %v2672_v1 }
  0x2e   : > { %2310 = vmatpush3.bf16.msra.mxu1 %v2597_v45  ;;  %2340 = vmatpush3.bf16.msra.mxu0 %v2598_v47  ;;  %v916_v45 = vor.u32 %v915_v41, %v912_v40  ;;  %v919_v47 = vshrl.u32 %v2970_v42, 16 }
  0x2f   : > { %2311 = vmatprep.subr.bf16.mxu1 %v2672_v1  ;;  %2341 = vmatprep.subr.bf16.mxu0 %v2672_v1 }
  0x30   : > { %v921_v52 = vrot.slane %v919_v47, 1  ;;  %v2645_v47 = vld [vmem:[%s3355_s1 + $0x140] sm:$0xff]  }
  0x31   : > { %2292 = vmatmul.mubr.msk.bf16.gmra.mxu0 %vm330_vm1, %v283_v50 }
  0x32   : > { %2312 = vmatpush3.bf16.msra.mxu1 %v2599_v49  ;;  %2342 = vmatpush3.bf16.msra.mxu0 %v2600_v51  ;;  %v2620_v49 = vld [vmem:[%s3355_s1 + $0xd8] sm:$0xff]   ;;  %v742_v51 = vrot.slane %v2970_v42, 1  ;;  %v2642_v42 = vld [vmem:[%s3355_s1 + $0x148] sm:$0xff]  }
  0x33   : > { %2363 = vmatprep.subr.bf16.mxu1 %v2672_v1  ;;  %2343 = vmatprep.mubr.msk.bf16.mxu0 %vm2673_vm0, %v2672_v1 }
  0x34   : > { %2393 = vmatprep.subr.bf16.mxu0 %v2672_v1 }
  0x35   : > { %2314 = vmatmul.mubr.msk.bf16.vlgmr.msra.gmra.mxu1 %vm330_vm1, %v2747_v7  ;;  %v553_v7 = vrot.slane %v2761_v13, 1 }
  0x36   : > { %2364 = vmatpush3.bf16.msra.mxu1 %v2601_v53  ;;  %2317 = vmatprep.mubr.msk.bf16.mxu1 %vm2673_vm0, %v2672_v1  ;;  %v924_v53 = vrot.slane %v922_v48, 2 }
  0x37   : > { %2365 = vmatprep.subr.bf16.mxu1 %v2672_v1  ;;  %v554_v11 = vsel %vm547_vm3, %v551_v59, %v553_v7  ;;  %v556_v17 = vsel %vm547_vm3, %v553_v7, %v555_v12  ;;  %v931_v59 = vshll.u32 %v2868_v61, 16  ;;  %v745_v7 = vsel %vm547_vm3, %v742_v51, %v744_v3 }
  0x39   : > { %2344 = vmatmul.mubr.msk.bf16.vlgmr.msra.gmra.mxu0 %vm330_vm1, %v550_v56  ;;  %v743_v56 = vsel %vm547_vm3, %v740_v39, %v742_v51  ;;  %v2640_v39 = vld [vmem:[%s3355_s1 + $0x120] sm:$0xff]  }
  0x3a   : > { %2394 = vmatpush3.bf16.msra.mxu0 %v2603_v57  ;;  %2347 = vmatprep.mubr.msk.bf16.mxu0 %vm2673_vm0, %v2672_v1  ;;  %v925_v57 = vor.u32 %v924_v53, %v921_v52  ;;  %v1098_v52 = vrot.slane %v3022_v4, 2  ;;  %v2644_v53 = vld [vmem:[%s2740_s27 + $0x30] ss:$0 sps:$4 sm:$0x33]  }
  0x3b   : > { %2366 = vmatpush3.bf16.msra.mxu1 %v2604_v58  ;;  %2395 = vmatprep.subr.bf16.mxu0 %v2672_v1  ;;  %v928_v58 = vshrl.u32 %v2868_v61, 16 }
  0x3c   : > { %2367 = vmatprep.subr.bf16.mxu1 %v2672_v1  ;;  %v926_v63 = vsel %vm891_vm4, %v916_v45, %v925_v57 }
  0x3d   : > { %2318 = vmatmul.mubr.msk.bf16.gmra.mxu1 %vm330_vm1, %v2750_v8  ;;  %v2609_v8 = vld [vmem:[%s3355_s1 + $0xa8] sm:$0xff]  }
  0x3e   : > { %2396 = vmatpush3.bf16.msra.mxu0 %v2605_v60  ;;  %2321 = vmatprep.mubr.msk.bf16.mxu1 %vm2673_vm0, %v2672_v1  ;;  %v2624_v60 = vld [vmem:[%s3355_s1 + $0xf8] sm:$0xff]  }
  0x3f   : > { %2368 = vmatpush3.bf16.msra.mxu1 %v2606_v62  ;;  %2397 = vmatprep.subr.bf16.mxu0 %v2672_v1  ;;  %v2626_v62 = vld [vmem:[%s3355_s1 + $0xc8] sm:$0xff]  }
  0x40   : > { %2369 = vmatprep.subr.bf16.mxu1 %v2672_v1 }
  0x41   : > { %2348 = vmatmul.mubr.msk.bf16.gmra.mxu0 %vm330_vm1, %v552_v0  ;;  %v930_v0 = vrot.slane %v928_v58, 1 }
  0x42   : > { %2351 = vmatprep.mubr.msk.bf16.mxu0 %vm2673_vm0, %v2672_v1  ;;  %2398 = vmatpush3.bf16.msra.mxu0 %v2607_v2  ;;  %v933_v2 = vrot.slane %v931_v59, 2  ;;  %v1287_v59 = vrot.slane %v2644_v53, 2 }
  0x43   : > { %2370 = vmatpush3.bf16.msra.mxu1 %v2608_v5  ;;  %2399 = vmatprep.subr.bf16.mxu0 %v2672_v1  ;;  %v2628_v5 = vld [vmem:[%s3355_s1 + $0xf0] sm:$0xff]  }
  0x44   : > { %2371 = vmatprep.subr.bf16.mxu1 %v2672_v1 }
  0x45   : > { %2322 = vmatmul.mubr.msk.bf16.gmra.mxu1 %vm330_vm1, %v2767_v15  ;;  %v687_v15 = vld [vmem:[%s2740_s27 + $0x4] sm:$0xe] }
  0x46   : > { %2325 = vmatprep.mubr.msk.bf16.mxu1 %vm2673_vm0, %v2672_v1  ;;  %2400 = vmatpush3.bf16.msra.mxu0 %v2609_v8  ;;  %v2029_v18 = vcombine.low %v687_v15, %v2925_v16  ;;  %v934_v8 = vor.u32 %v933_v2, %v930_v0  ;;  %v1073_v15 = vld [vmem:[%s2740_s27 + $0x4] sm:$0xc] }
  0x47   : > { %2372 = vmatpush3.bf16.msra.mxu1 %v2610_v9  ;;  %2401 = vmatprep.subr.bf16.mxu0 %v2672_v1  ;;  %v937_v9 = vshrl.u32 %v3022_v4, 16 }
  0x48   : > { %2423 = vmatprep.subr.bf16.mxu1 %v2672_v1  ;;  %v893_v22 = vshrl.u32 %v2029_v18, 16  ;;  %v896_v23 = vshll.u32 %v2029_v18, 16  ;;  %v737_v26 = vrot.slane %v2029_v18, 1  ;;  %v2076_v18 = vcombine.low %v1073_v15, %v2925_v16 }
  0x49   : > { %2352 = vmatmul.mubr.msk.bf16.gmra.mxu0 %vm330_vm1, %v554_v11  ;;  %v935_v11 = vsel %vm891_vm4, %v925_v57, %v934_v8  ;;  %v939_v3 = vrot.slane %v937_v9, 1 }
  0x4a   : > { %2355 = vmatprep.mubr.msk.bf16.mxu0 %vm2673_vm0, %v2672_v1  ;;  %2402 = vmatpush3.bf16.msra.mxu0 %v2611_v10  ;;  %v895_v21 = vrot.slane %v893_v22, 1  ;;  %v898_v28 = vrot.slane %v896_v23, 2  ;;  %v739_v32 = vsel %vm547_vm3, %v737_v26, %v738_v27  ;;  %v940_v10 = vshll.u32 %v3022_v4, 16  ;;  %v3049_v22 = vld [vmem:[%s2740_s27 + $0xc] sm:$0xf]  ;;  %v3061_v26 = vld [vmem:[%s2740_s27 + $0x10] sm:$0xff]  }
  0x4b   : > { %2453 = vmatprep.subr.bf16.mxu0 %v2672_v1  ;;  %v1279_v27 = vrot.slane %v3061_v26, 2  ;;  %v1631_v9 = vrot.slane %v3061_v26, 3 }
  0x4c   : > { %v899_v33 = vor.u32 %v898_v28, %v895_v21  ;;  %v942_v12 = vrot.slane %v940_v10, 2  ;;  %v2633_v28 = vld [vmem:[%s3355_s1 + $0x160] sm:$0xff]  }
  0x4d   : > { %2326 = vmatmul.mubr.msk.bf16.gmra.mxu1 %vm330_vm1, %v2761_v13  ;;  %v901_v13 = vshrl.u32 %v2935_v19, 16 }
  0x4e   : > { %2329 = vmatprep.mubr.msk.bf16.mxu1 %vm2673_vm0, %v2672_v1 }
  0x4f   : > { %v903_v29 = vrot.slane %v901_v13, 1  ;;  %v1089_v13 = vrot.slane %v2076_v18, 2 }
  0x51   : > { %2356 = vmatmul.mubr.msk.bf16.gmra.mxu0 %vm330_vm1, %v556_v17  ;;  %v907_v34 = vor.u32 %v906_v30, %v903_v29  ;;  %v943_v17 = vor.u32 %v942_v12, %v939_v3  ;;  %v1091_v16 = vsel %vm1088_vm5, %v1089_v13, %v1090_v24  ;;  %v1092_v29 = vrot.slane %v2950_v31, 2  ;;  %v3081_v30 = vld [vmem:[%s2740_s27 + $0x18] sm:$0xff]  }
  0x52   : > { %2359 = vmatprep.mubr.msk.bf16.mxu0 %vm2673_vm0, %v2672_v1  ;;  %v2636_v31 = vld [vmem:[%s3355_s1 + $0x158] sm:$0xff]   ;;  %v1451_v2 = vshrl.u32 %v3081_v30, 16 }
  0x53   : > { %v908_v37 = vsel %vm891_vm4, %v899_v33, %v907_v34  ;;  %v917_v50 = vsel %vm891_vm4, %v907_v34, %v916_v45  ;;  %v944_v23 = vsel %vm891_vm4, %v934_v8, %v943_v17  ;;  %v1281_v33 = vrot.slane %v3081_v30, 2  ;;  %v2637_v34 = vld [vmem:[%s3355_s1 + $0x128] sm:$0xff]  }
  0x54   : > { %v1095_v40 = vsel %vm1088_vm5, %v1092_v29, %v1094_v36  ;;  %v1096_v45 = vrot.slane %v2868_v61, 2  ;;  %v1454_v8 = vshll.u32 %v3081_v30, 16  ;;  %v1453_v3 = vrot.slane %v1451_v2, 2 }
  0x55   : > { %2330 = vmatmul.mubr.msk.bf16.gmra.mxu1 %vm330_vm1, %v2764_v14  ;;  %v2614_v14 = vld [vmem:[%s3355_s1 + $0xe8] sm:$0xff]   ;;  %v1282_v35 = vsel %vm1088_vm5, %v1279_v27, %v1281_v33 }
  0x56   : > { %2373 = vmatprep.mubr.msk.bf16.mxu1 %vm2673_vm0, %v2672_v1  ;;  %v1097_v48 = vsel %vm1088_vm5, %v1094_v36, %v1096_v45  ;;  %v1099_v58 = vsel %vm1088_vm5, %v1096_v45, %v1098_v52  ;;  %v1456_v12 = vrot.slane %v1454_v8, 3 }
  0x58   : > { %v1457_v17 = vor.u32 %v1456_v12, %v1453_v3 }
  0x59   : > { %2360 = vmatmul.mubr.msk.bf16.gmra.mxu0 %vm330_vm1, %v558_v25  ;;  %v3058_v25 = vcombine.low %v1228_v20, %v3049_v22 }
  0x5a   : > { %2403 = vmatprep.mubr.msk.bf16.mxu0 %vm2673_vm0, %v2672_v1 }
  0x5b   : > { %v1278_v19 = vrot.slane %v3058_v25, 2 }
  0x5d   : > { %2374 = vmatmul.mubr.msk.bf16.vlgmr.msra.gmra.mxu1 %vm330_vm1, %v739_v32  ;;  %v1280_v21 = vsel %vm1088_vm5, %v1278_v19, %v1279_v27  ;;  %v2634_v32 = vld [vmem:[%s3355_s1 + $0x130] sm:$0xff]  }
  0x5e   : > { %2424 = vmatpush3.bf16.msra.mxu1 %v2614_v14  ;;  %2377 = vmatprep.mubr.msk.bf16.mxu1 %vm2673_vm0, %v2672_v1  ;;  %v1093_v14 = vsel %vm1088_vm5, %v1090_v24, %v1092_v29  ;;  %v2647_v29 = vld [vmem:[%s2740_s27 + $0x30] ss:$0 sps:$4 sm:$0x77]  }
  0x5f   : > { %2425 = vmatprep.subr.bf16.mxu1 %v2672_v1 }
  0x61   : > { %2404 = vmatmul.mubr.msk.bf16.vlgmr.msra.gmra.mxu0 %vm330_vm1, %v908_v37  ;;  %v3106_v37 = vld [vmem:[%s2740_s27 + $0x20] sm:$0xff]  }
  0x62   : > { %2454 = vmatpush3.bf16.msra.mxu0 %v2615_v38  ;;  %2407 = vmatprep.mubr.msk.bf16.mxu0 %vm2673_vm0, %v2672_v1  ;;  %v2639_v38 = vld [vmem:[%s3355_s1 + $0x150] sm:$0xff]   ;;  %v1283_v41 = vrot.slane %v3106_v37, 2  ;;  %v1460_v18 = vshrl.u32 %v3106_v37, 16  ;;  %v1463_v20 = vshll.u32 %v3106_v37, 16  ;;  %v1635_v27 = vrot.slane %v3106_v37, 3 }
  0x63   : > { %2426 = vmatpush3.bf16.msra.mxu1 %v2617_v43  ;;  %2455 = vmatprep.subr.bf16.mxu0 %v2672_v1  ;;  %v2643_v43 = vld [vmem:[%s3355_s1 + $0x118] sm:$0xff]  }
  0x64   : > { %2427 = vmatprep.subr.bf16.mxu1 %v2672_v1  ;;  %v1462_v13 = vrot.slane %v1460_v18, 2  ;;  %v1465_v24 = vrot.slane %v1463_v20, 3 }
  0x65   : > { %2378 = vmatmul.mubr.msk.bf16.gmra.mxu1 %vm330_vm1, %v741_v44  ;;  %v1284_v44 = vsel %vm1088_vm5, %v1281_v33, %v1283_v41  ;;  %v1481_v33 = vshll.u32 %v2647_v29, 16 }
  0x66   : > { %2456 = vmatpush3.bf16.msra.mxu0 %v2618_v46  ;;  %2381 = vmatprep.mubr.msk.bf16.mxu1 %vm2673_vm0, %v2672_v1  ;;  %v3135_v46 = vld [vmem:[%s2740_s27 + $0x28] sm:$0xff]  }
  0x67   : > { %2428 = vmatpush3.bf16.msra.mxu1 %v2620_v49  ;;  %2457 = vmatprep.subr.bf16.mxu0 %v2672_v1  ;;  %v1285_v61 = vrot.slane %v3135_v46, 2  ;;  %v1434_v49 = vshrl.u32 %v3058_v25, 16  ;;  %v1483_v36 = vrot.slane %v1481_v33, 3 }
  0x68   : > { %2429 = vmatprep.subr.bf16.mxu1 %v2672_v1 }
  0x69   : > { %2408 = vmatmul.mubr.msk.bf16.gmra.mxu0 %vm330_vm1, %v917_v50  ;;  %v1437_v50 = vshll.u32 %v3058_v25, 16  ;;  %v1286_v51 = vsel %vm1088_vm5, %v1283_v41, %v1285_v61  ;;  %v1288_v4 = vsel %vm1088_vm5, %v1285_v61, %v1287_v59 }
  0x6a   : > { %2411 = vmatprep.mubr.msk.bf16.mxu0 %vm2673_vm0, %v2672_v1  ;;  %2458 = vmatpush3.bf16.msra.mxu0 %v2621_v54  ;;  %v1442_v54 = vshrl.u32 %v3061_v26, 16 }
  0x6b   : > { %2430 = vmatpush3.bf16.msra.mxu1 %v2623_v55  ;;  %2459 = vmatprep.subr.bf16.mxu0 %v2672_v1  ;;  %v1445_v55 = vshll.u32 %v3061_v26, 16  ;;  %v1439_v57 = vrot.slane %v1437_v50, 3  ;;  %v1466_v26 = vor.u32 %v1465_v24, %v1462_v13 }
  0x6c   : > { %2431 = vmatprep.subr.bf16.mxu1 %v2672_v1 }
  0x6d   : > { %2382 = vmatmul.mubr.msk.bf16.gmra.mxu1 %vm330_vm1, %v743_v56  ;;  %v1436_v56 = vrot.slane %v1434_v49, 2  ;;  %v1467_v19 = vsel %vm1432_vm6, %v1457_v17, %v1466_v26 }
  0x6e   : > { %2385 = vmatprep.mubr.msk.bf16.mxu1 %vm2673_vm0, %v2672_v1  ;;  %2460 = vmatpush3.bf16.msra.mxu0 %v2624_v60  ;;  %v1444_v60 = vrot.slane %v1442_v54, 2 }
  0x6f   : > { %2432 = vmatpush3.bf16.msra.mxu1 %v2626_v62  ;;  %2461 = vmatprep.subr.bf16.mxu0 %v2672_v1  ;;  %v1447_v62 = vrot.slane %v1445_v55, 3  ;;  %v1440_v0 = vor.u32 %v1439_v57, %v1436_v56 }
  0x70   : > { %2483 = vmatprep.subr.bf16.mxu1 %v2672_v1 }
  0x71   : > { %2412 = vmatmul.mubr.msk.bf16.gmra.mxu0 %vm330_vm1, %v926_v63  ;;  %v1614_v63 = vld [vmem:[%s2740_s27 + $0x8] sm:$0x8] }
  0x72   : > { %2415 = vmatprep.mubr.msk.bf16.mxu0 %vm2673_vm0, %v2672_v1  ;;  %2462 = vmatpush3.bf16.msra.mxu0 %v2628_v5  ;;  %v1448_v5 = vor.u32 %v1447_v62, %v1444_v60 }
  0x73   : > { %2513 = vmatprep.subr.bf16.mxu0 %v2672_v1 }
  0x74   : > { %v1449_v10 = vsel %vm1432_vm6, %v1440_v0, %v1448_v5 }
  0x75   : > { %2386 = vmatmul.mubr.msk.bf16.gmra.mxu1 %vm330_vm1, %v745_v7  ;;  %v2144_v7 = vcombine.low %v1614_v63, %v3049_v22  ;;  %v1458_v22 = vsel %vm1432_vm6, %v1448_v5, %v1457_v17 }
  0x76   : > { %2389 = vmatprep.mubr.msk.bf16.mxu1 %vm2673_vm0, %v2672_v1 }
  0x79   : > { %2416 = vmatmul.mubr.msk.bf16.gmra.mxu0 %vm330_vm1, %v935_v11  ;;  %v1630_v11 = vrot.slane %v2144_v7, 3 }
  0x7a   : > { %2419 = vmatprep.mubr.msk.bf16.mxu0 %vm2673_vm0, %v2672_v1 }
  0x7b   : > { %v1632_v15 = vsel %vm1629_vm7, %v1630_v11, %v1631_v9 }
  0x7d   : > { %2390 = vmatmul.mubr.msk.bf16.gmra.mxu1 %vm330_vm1, %v2895_v6  ;;  %v2630_v6 = vld [vmem:[%s3355_s1 + $0x138] sm:$0xff]  }
  0x7e   : > { %2433 = vmatprep.mubr.msk.bf16.mxu1 %vm2673_vm0, %v2672_v1 }
  0x81   : > { %2420 = vmatmul.mubr.msk.bf16.gmra.mxu0 %vm330_vm1, %v944_v23  ;;  %v1633_v23 = vrot.slane %v3081_v30, 3 }
  0x82   : > { %2463 = vmatprep.mubr.msk.bf16.mxu0 %vm2673_vm0, %v2672_v1 }
  0x83   : > { %v1634_v25 = vsel %vm1629_vm7, %v1631_v9, %v1633_v23  ;;  %v1636_v30 = vsel %vm1629_vm7, %v1633_v23, %v1635_v27 }
  0x85   : > { %2434 = vmatmul.mubr.msk.bf16.vlgmr.msra.gmra.mxu1 %vm330_vm1, %v1091_v16  ;;  %v1469_v16 = vshrl.u32 %v3135_v46, 16 }
  0x86   : > { %2484 = vmatpush3.bf16.msra.mxu1 %v2630_v6  ;;  %2437 = vmatprep.mubr.msk.bf16.mxu1 %vm2673_vm0, %v2672_v1  ;;  %v1472_v6 = vshll.u32 %v3135_v46, 16 }
  0x87   : > { %2485 = vmatprep.subr.bf16.mxu1 %v2672_v1 }
  0x89   : > { %2464 = vmatmul.mubr.msk.bf16.vlgmr.msra.gmra.mxu0 %vm330_vm1, %v1280_v21  ;;  %v1471_v21 = vrot.slane %v1469_v16, 2 }
  0x8a   : > { %2514 = vmatpush3.bf16.msra.mxu0 %v2633_v28  ;;  %2467 = vmatprep.mubr.msk.bf16.mxu0 %vm2673_vm0, %v2672_v1  ;;  %v1474_v28 = vrot.slane %v1472_v6, 3 }
  0x8b   : > { %2486 = vmatpush3.bf16.msra.mxu1 %v2634_v32  ;;  %2515 = vmatprep.subr.bf16.mxu0 %v2672_v1 }
  0x8c   : > { %2487 = vmatprep.subr.bf16.mxu1 %v2672_v1  ;;  %v1475_v32 = vor.u32 %v1474_v28, %v1471_v21 }
  0x8d   : > { %2438 = vmatmul.mubr.msk.bf16.gmra.mxu1 %vm330_vm1, %v1093_v14  ;;  %v1478_v14 = vshrl.u32 %v2647_v29, 16 }
  0x8e   : > { %2516 = vmatpush3.bf16.msra.mxu0 %v2636_v31  ;;  %2441 = vmatprep.mubr.msk.bf16.mxu1 %vm2673_vm0, %v2672_v1  ;;  %v1476_v31 = vsel %vm1432_vm6, %v1466_v26, %v1475_v32 }
  0x8f   : > { %2488 = vmatpush3.bf16.msra.mxu1 %v2637_v34  ;;  %2517 = vmatprep.subr.bf16.mxu0 %v2672_v1  ;;  %v1637_v34 = vrot.slane %v3135_v46, 3 }
  0x90   : > { %2489 = vmatprep.subr.bf16.mxu1 %v2672_v1 }
  0x91   : > { %2468 = vmatmul.mubr.msk.bf16.gmra.mxu0 %vm330_vm1, %v1282_v35  ;;  %v1480_v35 = vrot.slane %v1478_v14, 2  ;;  %v1638_v37 = vsel %vm1629_vm7, %v1635_v27, %v1637_v34 }
  0x92   : > { %2471 = vmatprep.mubr.msk.bf16.mxu0 %vm2673_vm0, %v2672_v1  ;;  %2518 = vmatpush3.bf16.msra.mxu0 %v2639_v38 }
  0x93   : > { %2490 = vmatpush3.bf16.msra.mxu1 %v2640_v39  ;;  %2519 = vmatprep.subr.bf16.mxu0 %v2672_v1  ;;  %v1484_v38 = vor.u32 %v1483_v36, %v1480_v35 }
  0x94   : > { %2491 = vmatprep.subr.bf16.mxu1 %v2672_v1 }
  0x95   : > { %2442 = vmatmul.mubr.msk.bf16.gmra.mxu1 %vm330_vm1, %v1095_v40  ;;  %v1485_v39 = vsel %vm1432_vm6, %v1475_v32, %v1484_v38  ;;  %v1639_v40 = vrot.slane %v2647_v29, 3 }
  0x96   : > { %2445 = vmatprep.mubr.msk.bf16.mxu1 %vm2673_vm0, %v2672_v1  ;;  %2520 = vmatpush3.bf16.msra.mxu0 %v2642_v42 }
  0x97   : > { %2492 = vmatpush3.bf16.msra.mxu1 %v2643_v43  ;;  %2521 = vmatprep.subr.bf16.mxu0 %v2672_v1  ;;  %v1640_v41 = vsel %vm1629_vm7, %v1637_v34, %v1639_v40 }
  0x99   : > { %2472 = vmatmul.mubr.msk.bf16.gmra.mxu0 %vm330_vm1, %v1284_v44 }
  0x9a   : > { %2475 = vmatprep.mubr.msk.bf16.mxu0 %vm2673_vm0, %v2672_v1  ;;  %2522 = vmatpush3.bf16.msra.mxu0 %v2645_v47 }
  0x9d   : > { %2446 = vmatmul.mubr.msk.bf16.gmra.mxu1 %vm330_vm1, %v1097_v48 }
  0x9e   : > { %2449 = vmatprep.mubr.msk.bf16.mxu1 %vm2673_vm0, %v2672_v1 }
  0xa1   : > { %2476 = vmatmul.mubr.msk.bf16.gmra.mxu0 %vm330_vm1, %v1286_v51 }
  0xa2   : > { %2479 = vmatprep.mubr.msk.bf16.mxu0 %vm2673_vm0, %v2672_v1 }
  0xa5   : > { %2450 = vmatmul.mubr.msk.bf16.gmra.mxu1 %vm330_vm1, %v1099_v58 }
  0xa6   : > { %2493 = vmatprep.mubr.msk.bf16.mxu1 %vm2673_vm0, %v2672_v1 }
  0xa9   : > { %2480 = vmatmul.mubr.msk.bf16.gmra.mxu0 %vm330_vm1, %v1288_v4 }
  0xaa   : > { %2523 = vmatprep.mubr.msk.bf16.mxu0 %vm2673_vm0, %v2672_v1 }
  0xad   : > { %2494 = vmatmul.mubr.msk.bf16.vlgmr.msra.gmra.mxu1 %vm330_vm1, %v1449_v10 }
  0xae   : > { %2497 = vmatprep.mubr.msk.bf16.mxu1 %vm2673_vm0, %v2672_v1 }
  0xb1   : > { %2524 = vmatmul.mubr.msk.bf16.vlgmr.msra.gmra.mxu0 %vm330_vm1, %v1632_v15 }
  0xb2   : > { %2527 = vmatprep.mubr.msk.bf16.mxu0 %vm2673_vm0, %v2672_v1 }
  0xb5   : > { %2498 = vmatmul.mubr.msk.bf16.gmra.mxu1 %vm330_vm1, %v1458_v22 }
  0xb6   : > { %2501 = vmatprep.mubr.msk.bf16.mxu1 %vm2673_vm0, %v2672_v1 }
  0xb9   : > { %2528 = vmatmul.mubr.msk.bf16.gmra.mxu0 %vm330_vm1, %v1634_v25 }
  0xba   : > { %2531 = vmatprep.mubr.msk.bf16.mxu0 %vm2673_vm0, %v2672_v1 }
  0xbd   : > { %2502 = vmatmul.mubr.msk.bf16.gmra.mxu1 %vm330_vm1, %v1467_v19 }
  0xbe   : > { %2505 = vmatprep.mubr.msk.bf16.mxu1 %vm2673_vm0, %v2672_v1 }
  0xc1   : > { %2532 = vmatmul.mubr.msk.bf16.gmra.mxu0 %vm330_vm1, %v1636_v30 }
  0xc2   : > { %2535 = vmatprep.mubr.msk.bf16.mxu0 %vm2673_vm0, %v2672_v1 }
  0xc5   : > { %2506 = vmatmul.mubr.msk.bf16.gmra.mxu1 %vm330_vm1, %v1476_v31 }
  0xc6   : > { %2509 = vmatprep.mubr.msk.bf16.mxu1 %vm2673_vm0, %v2672_v1 }
  0xc9   : > { %2536 = vmatmul.mubr.msk.bf16.gmra.mxu0 %vm330_vm1, %v1638_v37 }
  0xca   : > { %2539 = vmatprep.mubr.msk.bf16.mxu0 %vm2673_vm0, %v2672_v1  ;;  %vm1833_vm0 = vcmask 1044484  }
  0xcd   : > { %2510 = vmatmul.mubr.msk.bf16.gmra.mxu1 %vm330_vm1, %v1485_v39 }
  0xd1   : > { %2540 = vmatmul.mubr.msk.bf16.gmra.mxu0 %vm330_vm1, %v1640_v41  ;;  %vm3313_vm1 = vmor %vm1832_vm15, %vm1833_vm0 }
  0xe1   : > { %v380_v42 = vpop.f32.mrf.mxu0  ;;  %v404_v43 = vpop.f32.mrf.mxu1 }
  0xe3   : > { %v2285_v44 = vpop.f32.mrf.mxu0  ;;  %v2297_v45 = vpop.f32.mrf.mxu1 }
  0xe5   : > { %v383_v46 = vpop.f32.mrf.mxu0  ;;  %v407_v47 = vpop.f32.mrf.mxu1 }
  0xe7   : > { %v2286_v48 = vpop.f32.mrf.mxu0  ;;  %v2298_v61 = vpop.f32.mrf.mxu1 }
  0xe9   : > { %v388_v49 = vpop.f32.mrf.mxu0  ;;  %v412_v50 = vpop.f32.mrf.mxu1 }
  0xeb   : > { %v2289_v51 = vpop.f32.mrf.mxu0  ;;  %v2301_v52 = vpop.f32.mrf.mxu1 }
  0xed   : > { %v391_v1 = vpop.f32.mrf.mxu0  ;;  %v415_v53 = vpop.f32.mrf.mxu1 }
  0xef   : > { %v2290_v54 = vpop.f32.mrf.mxu0  ;;  %v2302_v55 = vpop.f32.mrf.mxu1 }
  0xf1   : > { %v396_v56 = vpop.f32.mrf.mxu0 }
  0xf3   : > { %v2293_v57 = vpop.f32.mrf.mxu0 }
  0xf5   : > { %v399_v58 = vpop.f32.mrf.mxu0  ;;  %v493_v59 = vpop.f32.mrf.mxu1 }
  0xf6   : > { %v494_v60 = vadd.f32 %v493_v59, %v380_v42 }
  0xf7   : > { %v2294_v62 = vpop.f32.mrf.mxu0  ;;  %v2315_v63 = vpop.f32.mrf.mxu1 }
  0xf9   : > { %v496_v0 = vpop.f32.mrf.mxu1  ;;  %v638_v2 = vpop.f32.mrf.mxu0 }
  0xfa   : > { %v497_v4 = vadd.f32 %v496_v0, %v383_v46  ;;  %v677_v5 = vadd.f32 %v638_v2, %v494_v60 }
  0xfb   : > { %v2316_v7 = vpop.f32.mrf.mxu1  ;;  %v2345_v8 = vpop.f32.mrf.mxu0 }
  0xfd   : > { %v501_v9 = vpop.f32.mrf.mxu1  ;;  %v641_v10 = vpop.f32.mrf.mxu0 }
  0xfe   : > { %v502_v11 = vadd.f32 %v501_v9, %v388_v49  ;;  %v678_v3 = vadd.f32 %v641_v10, %v497_v4 }
  0xff   : > { %v2319_v12 = vpop.f32.mrf.mxu1  ;;  %v2346_v15 = vpop.f32.mrf.mxu0 }
 0x101   : > { %v504_v17 = vpop.f32.mrf.mxu1  ;;  %v646_v18 = vpop.f32.mrf.mxu0 }
 0x102   : > { %v505_v20 = vadd.f32 %v504_v17, %v391_v1  ;;  %v679_v22 = vadd.f32 %v646_v18, %v502_v11 }
 0x103   : > { %v2320_v23 = vpop.f32.mrf.mxu1  ;;  %v2349_v13 = vpop.f32.mrf.mxu0 }
 0x105   : > { %v509_v24 = vpop.f32.mrf.mxu1  ;;  %v649_v25 = vpop.f32.mrf.mxu0 }
 0x106   : > { %v510_v26 = vadd.f32 %v509_v24, %v396_v56  ;;  %v680_v16 = vadd.f32 %v649_v25, %v505_v20 }
 0x107   : > { %v2323_v6 = vpop.f32.mrf.mxu1  ;;  %v2350_v19 = vpop.f32.mrf.mxu0 }
 0x109   : > { %v512_v27 = vpop.f32.mrf.mxu1  ;;  %v654_v21 = vpop.f32.mrf.mxu0 }
 0x10a   : > { %v513_v28 = vadd.f32 %v512_v27, %v399_v58  ;;  %v681_v29 = vadd.f32 %v654_v21, %v510_v26 }
 0x10b   : > { %v2324_v30 = vpop.f32.mrf.mxu1  ;;  %v2353_v32 = vpop.f32.mrf.mxu0 }
 0x10d   : > { %v517_v14 = vpop.f32.mrf.mxu1  ;;  %v657_v33 = vpop.f32.mrf.mxu0 }
 0x10e   : > { %v518_v31 = vadd.f32 %v517_v14, %v404_v43  ;;  %v682_v34 = vadd.f32 %v657_v33, %v513_v28 }
 0x10f   : > { %v2327_v35 = vpop.f32.mrf.mxu1  ;;  %v2354_v36 = vpop.f32.mrf.mxu0 }
 0x111   : > { %v520_v37 = vpop.f32.mrf.mxu1  ;;  %v662_v38 = vpop.f32.mrf.mxu0 }
 0x112   : > { %v521_v39 = vadd.f32 %v520_v37, %v407_v47  ;;  %v683_v40 = vadd.f32 %v662_v38, %v518_v31 }
 0x113   : > { %v2328_v41 = vpop.f32.mrf.mxu1  ;;  %v2357_v42 = vpop.f32.mrf.mxu0 }
 0x115   : > { %v525_v44 = vpop.f32.mrf.mxu1  ;;  %v665_v45 = vpop.f32.mrf.mxu0 }
 0x116   : > { %v526_v46 = vadd.f32 %v525_v44, %v412_v50  ;;  %v684_v48 = vadd.f32 %v665_v45, %v521_v39 }
 0x117   : > { %v2331_v61 = vpop.f32.mrf.mxu1  ;;  %v2358_v49 = vpop.f32.mrf.mxu0 }
 0x119   : > { %v528_v51 = vpop.f32.mrf.mxu1  ;;  %v670_v52 = vpop.f32.mrf.mxu0 }
 0x11a   : > { %v529_v1 = vadd.f32 %v528_v51, %v415_v53  ;;  %v685_v54 = vadd.f32 %v670_v52, %v526_v46 }
 0x11b   : > { %v2332_v43 = vpop.f32.mrf.mxu1  ;;  %v2361_v55 = vpop.f32.mrf.mxu0 }
 0x11d   : > { %v673_v56 = vpop.f32.mrf.mxu0  ;;  %v827_v57 = vpop.f32.mrf.mxu1 }
 0x11e   : > { %v686_v58 = vadd.f32 %v673_v56, %v529_v1  ;;  %v866_v59 = vadd.f32 %v827_v57, %v677_v5 }
 0x11f   : > { %v2362_v47 = vpop.f32.mrf.mxu0  ;;  %v2375_v60 = vpop.f32.mrf.mxu1 }
 0x121   : > { %v830_v62 = vpop.f32.mrf.mxu1  ;;  %v1024_v63 = vpop.f32.mrf.mxu0 }
 0x122   : > { %v867_v0 = vadd.f32 %v830_v62, %v678_v3  ;;  %v3216_v2 = vadd.f32 %v1024_v63, %v866_v59 }
 0x123   : > { %v2376_v50 = vpop.f32.mrf.mxu1  ;;  %v2405_v4 = vpop.f32.mrf.mxu0 }
 0x125   : > { %v835_v7 = vpop.f32.mrf.mxu1  ;;  %v1027_v8 = vpop.f32.mrf.mxu0 }
 0x126   : > { %v868_v9 = vadd.f32 %v835_v7, %v679_v22  ;;  %v3218_v53 = vadd.f32 %v1027_v8, %v867_v0 }
 0x127   : > { %v2379_v10 = vpop.f32.mrf.mxu1  ;;  %v2406_v11 = vpop.f32.mrf.mxu0 }
 0x129   : > { %v838_v12 = vpop.f32.mrf.mxu1  ;;  %v1032_v15 = vpop.f32.mrf.mxu0 }
 0x12a   : > { %v869_v17 = vadd.f32 %v838_v12, %v680_v16  ;;  %v3220_v5 = vadd.f32 %v1032_v15, %v868_v9 }
 0x12b   : > { %v2380_v18 = vpop.f32.mrf.mxu1  ;;  %v2409_v20 = vpop.f32.mrf.mxu0 }
 0x12d   : > { %v843_v23 = vpop.f32.mrf.mxu1  ;;  %v1035_v3 = vpop.f32.mrf.mxu0 }
 0x12e   : > { %v870_v13 = vadd.f32 %v843_v23, %v681_v29  ;;  %v3222_v24 = vadd.f32 %v1035_v3, %v869_v17 }
 0x12f   : > { %v2383_v25 = vpop.f32.mrf.mxu1  ;;  %v2410_v26 = vpop.f32.mrf.mxu0 }
 0x131   : > { %v846_v6 = vpop.f32.mrf.mxu1  ;;  %v1040_v22 = vpop.f32.mrf.mxu0 }
 0x132   : > { %v871_v19 = vadd.f32 %v846_v6, %v682_v34  ;;  %v3224_v27 = vadd.f32 %v1040_v22, %v870_v13 }
 0x133   : > { %v2384_v21 = vpop.f32.mrf.mxu1  ;;  %v2413_v28 = vpop.f32.mrf.mxu0 }
 0x135   : > { %v851_v30 = vpop.f32.mrf.mxu1  ;;  %v1043_v16 = vpop.f32.mrf.mxu0 }
 0x136   : > { %v872_v32 = vadd.f32 %v851_v30, %v683_v40  ;;  %v3226_v14 = vadd.f32 %v1043_v16, %v871_v19 }
 0x137   : > { %v2387_v33 = vpop.f32.mrf.mxu1  ;;  %v2414_v31 = vpop.f32.mrf.mxu0 }
 0x139   : > { %v854_v35 = vpop.f32.mrf.mxu1  ;;  %v1048_v29 = vpop.f32.mrf.mxu0 }
 0x13a   : > { %v873_v36 = vadd.f32 %v854_v35, %v684_v48  ;;  %v3228_v37 = vadd.f32 %v1048_v29, %v872_v32 }
 0x13b   : > { %v2388_v38 = vpop.f32.mrf.mxu1  ;;  %v2417_v39 = vpop.f32.mrf.mxu0 }
 0x13d   : > { %v859_v41 = vpop.f32.mrf.mxu1  ;;  %v1051_v34 = vpop.f32.mrf.mxu0 }
 0x13e   : > { %v874_v42 = vadd.f32 %v859_v41, %v685_v54  ;;  %v3230_v44 = vadd.f32 %v1051_v34, %v873_v36 }
 0x13f   : > { %v2391_v45 = vpop.f32.mrf.mxu1  ;;  %v2418_v46 = vpop.f32.mrf.mxu0 }
 0x141   : > { %v862_v61 = vpop.f32.mrf.mxu1  ;;  %v1056_v40 = vpop.f32.mrf.mxu0 }
 0x142   : > { %v875_v49 = vadd.f32 %v862_v61, %v686_v58  ;;  %v3232_v51 = vadd.f32 %v1056_v40, %v874_v42 }
 0x143   : > { %v2392_v52 = vpop.f32.mrf.mxu1  ;;  %v2421_v1 = vpop.f32.mrf.mxu0 }
 0x144   : > { %v3265_v52 = vld [vmem:[%s3356_s2] ss:$0 sm:$0xff] }
 0x145   : > { %v1059_v43 = vpop.f32.mrf.mxu0  ;;  %v1179_v48 = vpop.f32.mrf.mxu1 }
 0x146   : > { %v3234_v55 = vadd.f32 %v1059_v43, %v875_v49  ;;  %v1218_v29 = vadd.f32 %v1179_v48, %v3216_v2 }
 0x147   : > { %v2422_v56 = vpop.f32.mrf.mxu0  ;;  %v2435_v57 = vpop.f32.mrf.mxu1 }
 0x149   : > { %v1182_v59 = vpop.f32.mrf.mxu1  ;;  %v1368_v47 = vpop.f32.mrf.mxu0 }
 0x14a   : > { %v1407_v39 = vadd.f32 %v1368_v47, %v1218_v29  ;;  %v1219_v42 = vadd.f32 %v1182_v59, %v3218_v53 }
 0x14b   : > { %v2436_v54 = vpop.f32.mrf.mxu1  ;;  %v2465_v60 = vpop.f32.mrf.mxu0 }
 0x14d   : > { %v1187_v62 = vpop.f32.mrf.mxu1  ;;  %v1371_v63 = vpop.f32.mrf.mxu0 }
 0x14e   : > { %v1408_v40 = vadd.f32 %v1371_v63, %v1219_v42  ;;  %v1220_v43 = vadd.f32 %v1187_v62, %v3220_v5 }
 0x14f   : > { %v2439_v0 = vpop.f32.mrf.mxu1  ;;  %v2466_v50 = vpop.f32.mrf.mxu0 }
 0x151   : > { %v1190_v4 = vpop.f32.mrf.mxu1  ;;  %v1376_v58 = vpop.f32.mrf.mxu0 }
 0x152   : > { %v1409_v47 = vadd.f32 %v1376_v58, %v1220_v43  ;;  %v1221_v63 = vadd.f32 %v1190_v4, %v3222_v24 }
 0x153   : > { %v2440_v7 = vpop.f32.mrf.mxu1  ;;  %v2469_v8 = vpop.f32.mrf.mxu0 }
 0x155   : > { %v3236_v9 = vpop.f32.mrf.mxu1  ;;  %v1379_v10 = vpop.f32.mrf.mxu0 }
 0x157   : > { %v2443_v11 = vpop.f32.mrf.mxu1  ;;  %v2470_v12 = vpop.f32.mrf.mxu0 }
 0x158   : > { %v1410_v11 = vadd.f32 %v1379_v10, %v1221_v63 }
 0x159   : > { %v3238_v15 = vpop.f32.mrf.mxu1  ;;  %v3240_v17 = vpop.f32.mrf.mxu0 }
 0x15a   : > { %v1223_v29 = vadd.f32 %v3238_v15, %v3226_v14 }
 0x15b   : > { %v2444_v18 = vpop.f32.mrf.mxu1  ;;  %v2473_v20 = vpop.f32.mrf.mxu0 }
 0x15d   : > { %v3242_v23 = vpop.f32.mrf.mxu1  ;;  %v3244_v3 = vpop.f32.mrf.mxu0 }
 0x15f   : > { %v2447_v13 = vpop.f32.mrf.mxu1  ;;  %v2474_v25 = vpop.f32.mrf.mxu0 }
 0x160   : > { %v1222_v13 = vadd.f32 %v3236_v9, %v3224_v27 }
 0x161   : > { %v3246_v26 = vpop.f32.mrf.mxu1  ;;  %v3248_v6 = vpop.f32.mrf.mxu0 }
 0x163   : > { %v2448_v22 = vpop.f32.mrf.mxu1  ;;  %v2477_v19 = vpop.f32.mrf.mxu0 }
 0x165   : > { %v3250_v21 = vpop.f32.mrf.mxu1  ;;  %v3252_v28 = vpop.f32.mrf.mxu0 }
 0x167   : > { %v2451_v30 = vpop.f32.mrf.mxu1  ;;  %v2478_v16 = vpop.f32.mrf.mxu0 }
 0x168   : > { %v1411_v16 = vadd.f32 %v3240_v17, %v1222_v13  ;;  %v1412_v17 = vadd.f32 %v3244_v3, %v1223_v29 }
 0x169   : > { %v3254_v32 = vpop.f32.mrf.mxu1  ;;  %v3256_v33 = vpop.f32.mrf.mxu0 }
 0x16b   : > { %v2452_v31 = vpop.f32.mrf.mxu1  ;;  %v2481_v35 = vpop.f32.mrf.mxu0 }
 0x16d   : > { %v3259_v36 = vpop.f32.mrf.mxu0  ;;  %v1565_v38 = vpop.f32.mrf.mxu1 }
 0x16e   : > { %v1604_v45 = vadd.f32 %v1565_v38, %v1407_v39 }
 0x16f   : > { %v2482_v41 = vpop.f32.mrf.mxu0  ;;  %v2495_v34 = vpop.f32.mrf.mxu1 }
 0x171   : > { %v1568_v46 = vpop.f32.mrf.mxu1  ;;  %v1720_v61 = vpop.f32.mrf.mxu0 }
 0x172   : > { %v1759_v49 = vadd.f32 %v1720_v61, %v1604_v45  ;;  %v1605_v48 = vadd.f32 %v1568_v46, %v1408_v40  ;;  %v1224_v40 = vadd.f32 %v3242_v23, %v3228_v37 }
 0x173   : > { %v2496_v2 = vpop.f32.mrf.mxu1  ;;  %v2525_v1 = vpop.f32.mrf.mxu0 }
 0x174   : > { %v1776_v53 = vadd.f32 %v3265_v52, %v1759_v49  ;;  %v1413_v37 = vadd.f32 %v3248_v6, %v1224_v40 }
 0x175   : > { %v1573_v56 = vpop.f32.mrf.mxu1  ;;  %v1723_v57 = vpop.f32.mrf.mxu0 }
 0x176   : > { %v1760_v59 = vadd.f32 %v1723_v57, %v1605_v48  ;;  %v1606_v0 = vadd.f32 %v1573_v56, %v1409_v47  ;;  %v1786_v12 = vmax.f32 %v1776_v53, 0.0 }
 0x177   : > { %v2499_v54 = vpop.f32.mrf.mxu1  ;;  %v2526_v60 = vpop.f32.mrf.mxu0 }
 0x178   : > { %v1777_v50 = vadd.f32 %v3265_v52, %v1760_v59  ;;  %v1225_v60 = vadd.f32 %v3246_v26, %v3230_v44 }
 0x179   : > { %v1576_v7 = vpop.f32.mrf.mxu1  ;;  %v1728_v8 = vpop.f32.mrf.mxu0 }
 0x17a   : > { %v1787_v5 = vmax.f32 %v1777_v50, 0.0  ;;  %v1761_v62 = vadd.f32 %v1728_v8, %v1606_v0  ;;  %v1607_v4 = vadd.f32 %v1576_v7, %v1410_v11  ;;  %v1414_v11 = vadd.f32 %v3252_v28, %v1225_v60 }
 0x17b   : > { %v2500_v58 = vpop.f32.mrf.mxu1  ;;  %v2529_v18 = vpop.f32.mrf.mxu0 }
 0x17c   : > { %v1796_v24 = vpack.c.bf16 %v1787_v5, %v1786_v12  ;;  %v1778_v20 = vadd.f32 %v3265_v52, %v1761_v62  ;;  %v2174_v22 = vpack.c.bf16 %v1787_v5, %v1787_v5 }
 0x17d   : > { %v1581_v10 = vpop.f32.mrf.mxu1  ;;  %v1731_v25 = vpop.f32.mrf.mxu0 }
 0x17e   : > { %1802 = vst.msk [vmem:[%s3275_s25] sm:$0xf] %vm1801_vm8, %v1796_v24  ;;  %v1788_v19 = vmax.f32 %v1778_v20, 0.0  ;;  %v1762_v30 = vadd.f32 %v1731_v25, %v1607_v4  ;;  %v1608_v9 = vadd.f32 %v1581_v10, %v1411_v16  ;;  %v2158_v42 = vrot.slane %v2174_v22, 9 }
 0x17f   : > { %v2503_v31 = vpop.f32.mrf.mxu1  ;;  %v2530_v35 = vpop.f32.mrf.mxu0  ;;  %v1226_v24 = vadd.f32 %v3250_v21, %v3232_v51  ;;  %v1227_v51 = vadd.f32 %v3254_v32, %v3234_v55 }
 0x180   : > { %v2175_v38 = vpack.c.bf16 %v1788_v19, %v1788_v19  ;;  %v1779_v39 = vadd.f32 %v3265_v52, %v1762_v30 }
 0x181   : > { %v1584_v41 = vpop.f32.mrf.mxu1  ;;  %v1736_v34 = vpop.f32.mrf.mxu0  ;;  %v1415_v22 = vadd.f32 %v3256_v33, %v1226_v24 }
 0x182   : > { %v1814_v45 = vrot.slane %v2175_v38, 5  ;;  %v1789_v46 = vmax.f32 %v1779_v39, 0.0  ;;  %v1763_v61 = vadd.f32 %v1736_v34, %v1608_v9  ;;  %v1609_v1 = vadd.f32 %v1584_v41, %v1412_v17 }
 0x183   : > { %v2504_v14 = vpop.f32.mrf.mxu1  ;;  %v2533_v15 = vpop.f32.mrf.mxu0  ;;  %v2160_v23 = vrot.slane %v2175_v38, 10  ;;  %v1416_v39 = vadd.f32 %v3259_v36, %v1227_v51 }
 0x184   : > { %v1815_v49 = vsel %vm3286_vm11, %v2158_v42, %v1814_v45  ;;  %v2176_v2 = vpack.c.bf16 %v1789_v46, %v1789_v46  ;;  %v1780_v43 = vadd.f32 %v3265_v52, %v1763_v61 }
 0x185   : > { %1817 = vst.msk [vmem:[%s3275_s25 + $0x4] sm:$0xf] %vm1801_vm8, %v1815_v49  ;;  %v1589_v48 = vpop.f32.mrf.mxu1  ;;  %v1739_v56 = vpop.f32.mrf.mxu0 }
 0x186   : > { %v1825_v57 = vrot.slane %v2176_v2, 6  ;;  %v1764_v47 = vadd.f32 %v1739_v56, %v1609_v1  ;;  %v1790_v53 = vmax.f32 %v1780_v43, 0.0  ;;  %v1610_v0 = vadd.f32 %v1589_v48, %v1413_v37 }
 0x187   : > { %v2507_v59 = vpop.f32.mrf.mxu1  ;;  %v2534_v54 = vpop.f32.mrf.mxu0  ;;  %v2162_v5 = vrot.slane %v2176_v2, 11 }
 0x188   : > { %v1826_v63 = vsel %vm3299_vm14, %v2160_v23, %v1825_v57  ;;  %v1781_v50 = vadd.f32 %v3265_v52, %v1764_v47  ;;  %v2177_v6 = vpack.c.bf16 %v1790_v53, %v1790_v53 }
 0x189   : > { %1828 = vst.msk [vmem:[%s3275_s25 + $0x8] sm:$0xf] %vm1801_vm8, %v1826_v63  ;;  %v1592_v7 = vpop.f32.mrf.mxu1  ;;  %v1744_v8 = vpop.f32.mrf.mxu0 }
 0x18a   : > { %v1791_v44 = vmax.f32 %v1781_v50, 0.0  ;;  %v1765_v26 = vadd.f32 %v1744_v8, %v1610_v0  ;;  %v1837_v62 = vrot.slane %v2177_v6, 7  ;;  %v1611_v20 = vadd.f32 %v1592_v7, %v1414_v11 }
 0x18b   : > { %v2508_v58 = vpop.f32.mrf.mxu1  ;;  %v2537_v18 = vpop.f32.mrf.mxu0 }
 0x18c   : > { %v2178_v4 = vpack.c.bf16 %v1791_v44, %v1791_v44  ;;  %v1782_v13 = vadd.f32 %v3265_v52, %v1765_v26  ;;  %v1838_v28 = vsel %vm3313_vm1, %v2162_v5, %v1837_v62 }
 0x18d   : > { %v1597_v10 = vpop.f32.mrf.mxu1  ;;  %v1747_v25 = vpop.f32.mrf.mxu0  ;;  %1840 = vst.msk [vmem:[%s3275_s25 + $0xc] sm:$0xf] %vm1801_vm8, %v1838_v28 }
 0x18e   : > { %1844 = vst.msk [vmem:[%s3275_s25 + $0x10] sm:$0xf] %vm1801_vm8, %v2178_v4  ;;  %v1792_v19 = vmax.f32 %v1782_v13, 0.0  ;;  %v1766_v30 = vadd.f32 %v1747_v25, %v1611_v20  ;;  %v1612_v21 = vadd.f32 %v1597_v10, %v1415_v22 }
 0x18f   : > { %v2511_v16 = vpop.f32.mrf.mxu1  ;;  %v2538_v31 = vpop.f32.mrf.mxu0 }
 0x190   : > { %v1783_v35 = vadd.f32 %v3265_v52, %v1766_v30  ;;  %v2179_v9 = vpack.c.bf16 %v1792_v19, %v1792_v19 }
 0x191   : > { %v1600_v29 = vpop.f32.mrf.mxu1  ;;  %v1752_v38 = vpop.f32.mrf.mxu0 }
 0x192   : > { %v1793_v33 = vmax.f32 %v1783_v35, 0.0  ;;  %v1767_v41 = vadd.f32 %v1752_v38, %v1612_v21  ;;  %v1613_v45 = vadd.f32 %v1600_v29, %v1416_v39  ;;  %v2166_v55 = vrot.slane %v2179_v9, 9 }
 0x193   : > { %v2512_v34 = vpop.f32.mrf.mxu1  ;;  %v2541_v17 = vpop.f32.mrf.mxu0 }
 0x194   : > { %v2180_v42 = vpack.c.bf16 %v1793_v33, %v1793_v33  ;;  %v1784_v46 = vadd.f32 %v3265_v52, %v1767_v41 }
 0x195   : > { %v1755_v61 = vpop.f32.mrf.mxu0 }
 0x196   : > { %v1852_v32 = vrot.slane %v2180_v42, 5  ;;  %v1794_v14 = vmax.f32 %v1784_v46, 0.0  ;;  %v1768_v15 = vadd.f32 %v1755_v61, %v1613_v45  ;;  %v2168_v1 = vrot.slane %v2180_v42, 10 }
 0x197   : > { %v2542_v40 = vpop.f32.mrf.mxu0 }
 0x198   : > { %v1853_v36 = vsel %vm3286_vm11, %v2166_v55, %v1852_v32  ;;  %v2181_v49 = vpack.c.bf16 %v1794_v14, %v1794_v14  ;;  %v1785_v2 = vadd.f32 %v3265_v52, %v1768_v15 }
 0x199   : > { %1855 = vst.msk [vmem:[%s3275_s25 + $0x14] sm:$0xf] %vm1801_vm8, %v1853_v36 }
 0x19a   : > { %v1861_v43 = vrot.slane %v2181_v49, 6  ;;  %v1795_v48 = vmax.f32 %v1785_v2, 0.0  ;;  %v2170_v23 = vrot.slane %v2181_v49, 11 }
 0x19c   : > { %v1862_v56 = vsel %vm3299_vm14, %v2168_v1, %v1861_v43  ;;  %v2182_v37 = vpack.c.bf16 %v1795_v48, %v1795_v48 }
 0x19d   : > { %1864 = vst.msk [vmem:[%s3275_s25 + $0x18] sm:$0xf] %vm1801_vm8, %v1862_v56 }
 0x19e   : > { %v1869_v57 = vrot.slane %v2182_v37, 7 }
 0x1a0   : > { %v1870_v27 = vsel %vm3313_vm1, %v2170_v23, %v1869_v57 }
 0x1a1   : > { %1872 = vst.msk [vmem:[%s3275_s25 + $0x1c] sm:$0xf] %vm1801_vm8, %v1870_v27 }
 0x1a2 PF: > { %s13_s14 = sadd.s32 1, %s2670_s14   ;;  %s3364_s12 = smov %s2666_s13 }
 0x1a3   : > { %p10_p5 = scmp.ge.s32.totalorder %s13_s14, 4   ;;  %s3365_s13 = smov %s3367_s15 }
 0x1a5   :  { %12 = sbr.rel (!%p10_p5) target bundleno = 2 (0x2), region = 70 }

</bundles_post_ra>
